<compile_context>
chip_gen: v7x
topology: tpu7x:2x2x1
jax: 0.10.0
libtpu: 0.0.40
codegen_flags: <defaults>
</compile_context>

<pallas_src>
import functools
import math

import jax
import jax.numpy as jnp
from jax.experimental import pallas as pl
from jax.experimental.pallas import tpu as pltpu


def autopad(k, p=None):
    if p is None:
        p = k // 2 if isinstance(k, int) else [x // 2 for x in k]
    return p


# ----------------------------- Pallas kernel ------------------------------ #
def _conv_bn_silu_kernel(x_ref, w_ref, shift_ref, o_ref, acc_ref, *,
                         k, s, Ho, Wo):
    # x_ref:     (1, Hp, Wp, C1)   bf16, zero-padded NHWC image (one batch el.)
    # w_ref:     (k*k, C1, C2p)    bf16, BN scale folded in, C2 zero-padded
    # shift_ref: (1, C2p)          f32, BN shift
    # o_ref:     (1, Ho*Wo, C2p)   f32
    # acc_ref:   (Ho*Wo, C2p)      f32 VMEM scratch accumulator
    C1 = x_ref.shape[-1]
    M = Ho * Wo

    x = x_ref[0]                                    # (Hp, Wp, C1)
    acc_ref[...] = jnp.zeros_like(acc_ref)

    # In-kernel im2col: unrolled tap loop, one small MXU matmul per tap.
    for kh in range(k):
        for kw in range(k):
            h_end = kh + s * (Ho - 1) + 1
            w_end = kw + s * (Wo - 1) + 1
            xs = x[kh:h_end:s, kw:w_end:s, :]       # (Ho, Wo, C1)
            acc_ref[...] += jnp.dot(
                xs.reshape(M, C1), w_ref[kh * k + kw],
                preferred_element_type=jnp.float32)

    # Fused BN shift + SiLU epilogue in f32.
    y = acc_ref[...] + shift_ref[...]
    o_ref[0] = (y * jax.nn.sigmoid(y)).astype(o_ref.dtype)


def _conv_bn_silu(x_pad, w, shift, *, k, s, Ho, Wo):
    # x_pad: (N, Hp, Wp, C1) bf16; w: (k*k, C1, C2p) bf16; shift: (1, C2p) f32
    N, Hp, Wp, C1 = x_pad.shape
    kk, _, C2p = w.shape
    M = Ho * Wo

    kernel = functools.partial(_conv_bn_silu_kernel, k=k, s=s, Ho=Ho, Wo=Wo)
    return pl.pallas_call(
        kernel,
        out_shape=jax.ShapeDtypeStruct((N, M, C2p), jnp.float32),
        grid_spec=pltpu.PrefetchScalarGridSpec(
            num_scalar_prefetch=0,
            grid=(N,),
            in_specs=[
                pl.BlockSpec((1, Hp, Wp, C1), lambda n: (n, 0, 0, 0)),
                pl.BlockSpec((kk, C1, C2p), lambda n: (0, 0, 0)),
                pl.BlockSpec((1, C2p), lambda n: (0, 0)),
            ],
            out_specs=pl.BlockSpec((1, M, C2p), lambda n: (n, 0, 0)),
            scratch_shapes=[pltpu.VMEM((M, C2p), jnp.float32)],
        ),
        compiler_params=pltpu.CompilerParams(
            dimension_semantics=("parallel",),
            vmem_limit_bytes=32 * 1024 * 1024),
    )(x_pad, w, shift)


# --------------------------- Module equivalent ----------------------------- #
class ConvPallas:
    """JAX/Pallas equivalent of util.Conv (conv -> BN(eval) -> SiLU)."""

    def __init__(self, c1, c2, k=1, s=1, p=None, g=1, act=True, *, key=None):
        assert g == 1, "grouped conv not needed for this test"
        self.c1, self.c2, self.k, self.s = c1, c2, k, s
        self.p = autopad(k, p)
        self.eps = 1e-5
        key = jax.random.PRNGKey(0) if key is None else key
        kw, kg, kb, km, kv = jax.random.split(key, 5)
        # Conv2d weight (C2, C1, k, k), no bias — deterministic init.
        bound = 1.0 / math.sqrt(c1 * k * k)
        self.weight = jax.random.uniform(
            kw, (c2, c1, k, k), jnp.float32, -bound, bound)
        # BatchNorm2d params / running stats (eval-mode semantics).
        self.gamma = jax.random.uniform(kg, (c2,), jnp.float32, 0.5, 1.5)
        self.beta = jax.random.uniform(kb, (c2,), jnp.float32, -0.5, 0.5)
        self.running_mean = jax.random.uniform(km, (c2,), jnp.float32, -0.5, 0.5)
        self.running_var = jax.random.uniform(kv, (c2,), jnp.float32, 0.5, 1.5)
        # TODO(synk): training-mode BatchNorm (batch statistics) not implemented;
        # eval-mode running-stats semantics are used.

    def __call__(self, x_nchw):
        N, C1, H, W = x_nchw.shape
        k, s, p = self.k, self.s, self.p
        Ho = (H + 2 * p - k) // s + 1
        Wo = (W + 2 * p - k) // s + 1

        # NCHW -> NHWC, cast to bf16, zero-pad spatial dims.
        # TODO(synk): keeping the whole model in NHWC would remove the two
        # layout transposes; done here only to match the PyTorch interface.
        x = jnp.transpose(x_nchw, (0, 2, 3, 1)).astype(jnp.bfloat16)
        x = jnp.pad(x, ((0, 0), (p, p), (p, p), (0, 0)))

        # Fold BN into the weight (scale) and a shift vector.
        scale = self.gamma / jnp.sqrt(self.running_var + self.eps)   # (C2,)
        shift = self.beta - self.running_mean * scale                # (C2,)

        # Weight (C2, C1, kh, kw) -> (kh, kw, C1, C2) -> (k*k, C1, C2),
        # scale folded in, C2 padded to a lane-dense multiple of 128.
        w = jnp.transpose(self.weight, (2, 3, 1, 0)).reshape(k * k, C1, self.c2)
        w = w * scale[None, None, :]
        C2p = ((self.c2 + 127) // 128) * 128
        if C2p != self.c2:
            w = jnp.pad(w, ((0, 0), (0, 0), (0, C2p - self.c2)))
            shift = jnp.pad(shift, ((0, C2p - self.c2),))
        w = w.astype(jnp.bfloat16)
        shift = shift.reshape(1, C2p).astype(jnp.float32)

        out = _conv_bn_silu(x, w, shift, k=k, s=s, Ho=Ho, Wo=Wo)  # (N, M, C2p)
        out = out[:, :, :self.c2].reshape(N, Ho, Wo, self.c2)
        return jnp.transpose(out, (0, 3, 1, 2))  # back to NCHW


# ------------------------------ Reference --------------------------------- #
def _reference(x_nchw, m: ConvPallas):
    y = jax.lax.conv_general_dilated(
        x_nchw, m.weight, window_strides=(m.s, m.s),
        padding=[(m.p, m.p), (m.p, m.p)],
        dimension_numbers=("NCHW", "OIHW", "NCHW"))
    scale = (m.gamma / jnp.sqrt(m.running_var + m.eps)).reshape(1, -1, 1, 1)
    shift = (m.beta - m.running_mean * m.gamma /
             jnp.sqrt(m.running_var + m.eps)).reshape(1, -1, 1, 1)
    y = y * scale + shift
    return y * jax.nn.sigmoid(y)


if __name__ == "__main__":
    key = jax.random.PRNGKey(0)
    kx, kp = jax.random.split(key)
    N, C1, H, W = 2, 4, 16, 16
    C2, K = 8, 3
    x = jax.random.normal(kx, (N, C1, H, W), jnp.float32)

    mod = ConvPallas(C1, C2, k=K, s=1, key=kp)
    out = jax.block_until_ready(mod(x))

    ref = jax.block_until_ready(_reference(x, mod))
    assert out.shape == ref.shape == (N, C2, H, W)
    # bf16 matmul inputs with f32 accumulation -> relaxed tolerance vs f32 ref.
    assert jnp.allclose(out, ref, atol=3e-2, rtol=3e-2)
    print("KERNEL_OK")
</pallas_src>

<mosaic_0001>
module attributes {stable_mosaic.version = 11 : i64} {
  func.func @_conv_bn_silu_kernel(%arg0: i32, %arg1: memref<1x18x18x4xbf16, #tpu.memory_space<vmem>>, %arg2: memref<9x4x128xbf16, #tpu.memory_space<vmem>>, %arg3: memref<1x128xf32, #tpu.memory_space<vmem>>, %arg4: memref<1x256x128xf32, #tpu.memory_space<vmem>>, %arg5: memref<256x128xf32, #tpu.memory_space<vmem>>) attributes {dimension_semantics = [#tpu.dimension_semantics<parallel>], iteration_bounds = array<i64: 2>, scalar_prefetch = 0 : i64, scratch_operands = 1 : i64, tpu.core_type = #tpu.core_type<tc>, window_params = [{transform_indices = @transform_0, window_bounds = array<i64: 1, 18, 18, 4>}, {pipeline_mode = #tpu.pipeline_mode<synchronous>, transform_indices = @transform_1, window_bounds = array<i64: 9, 4, 128>}, {pipeline_mode = #tpu.pipeline_mode<synchronous>, transform_indices = @transform_2, window_bounds = array<i64: 1, 128>}, {transform_indices = @transform_3, window_bounds = array<i64: 1, 256, 128>}]} {
    %c0 = arith.constant 0 : index
    %c0_0 = arith.constant 0 : index
    %c0_1 = arith.constant 0 : index
    %c0_2 = arith.constant 0 : index
    %0 = vector.load %arg1[%c0, %c0_0, %c0_1, %c0_2] : memref<1x18x18x4xbf16, #tpu.memory_space<vmem>>, vector<1x18x18x4xbf16>
    %1 = vector.shape_cast %0 : vector<1x18x18x4xbf16> to vector<18x18x4xbf16>
    %cst = arith.constant 0.000000e+00 : f32
    %2 = vector.broadcast %cst : f32 to vector<256x128xf32>
    %c0_3 = arith.constant 0 : index
    %c0_4 = arith.constant 0 : index
    %3 = vector.load %arg5[%c0_3, %c0_4] : memref<256x128xf32, #tpu.memory_space<vmem>>, vector<256x128xf32>
    tpu.vector_store %arg5[%c0_3, %c0_4], %2 {strides = array<i32>} : memref<256x128xf32, #tpu.memory_space<vmem>>, vector<256x128xf32>,
    %4 = vector.extract_strided_slice %1 {offsets = [0, 0, 0], sizes = [16, 16, 4], strides = [1, 1, 1]} : vector<18x18x4xbf16> to vector<16x16x4xbf16>
    %c0_5 = arith.constant 0 : index
    %c0_6 = arith.constant 0 : index
    %5 = vector.load %arg5[%c0_5, %c0_6] : memref<256x128xf32, #tpu.memory_space<vmem>>, vector<256x128xf32>
    %6 = vector.shape_cast %4 : vector<16x16x4xbf16> to vector<256x4xbf16>
    %c0_7 = arith.constant 0 : index
    %c0_8 = arith.constant 0 : index
    %c0_9 = arith.constant 0 : index
    %7 = vector.load %arg2[%c0_7, %c0_8, %c0_9] : memref<9x4x128xbf16, #tpu.memory_space<vmem>>, vector<1x4x128xbf16>
    %8 = vector.shape_cast %7 : vector<1x4x128xbf16> to vector<4x128xbf16>
    %cst_10 = arith.constant dense<0.000000e+00> : vector<256x128xf32>
    %9 = tpu.matmul %6, %8, %cst_10 {dimension_numbers = #tpu.dot_dimension_numbers<[1], [0], [0], [1], [0, 0, 1, 1], [], []>} : vector<256x4xbf16>, vector<4x128xbf16>, vector<256x128xf32> -> vector<256x128xf32>
    %10 = arith.addf %5, %9 : vector<256x128xf32>
    %c0_11 = arith.constant 0 : index
    %c0_12 = arith.constant 0 : index
    %11 = vector.load %arg5[%c0_11, %c0_12] : memref<256x128xf32, #tpu.memory_space<vmem>>, vector<256x128xf32>
    tpu.vector_store %arg5[%c0_11, %c0_12], %10 {strides = array<i32>} : memref<256x128xf32, #tpu.memory_space<vmem>>, vector<256x128xf32>,
    %12 = vector.extract_strided_slice %1 {offsets = [0, 1, 0], sizes = [16, 16, 4], strides = [1, 1, 1]} : vector<18x18x4xbf16> to vector<16x16x4xbf16>
    %c0_13 = arith.constant 0 : index
    %c0_14 = arith.constant 0 : index
    %13 = vector.load %arg5[%c0_13, %c0_14] : memref<256x128xf32, #tpu.memory_space<vmem>>, vector<256x128xf32>
    %14 = vector.shape_cast %12 : vector<16x16x4xbf16> to vector<256x4xbf16>
    %c1 = arith.constant 1 : index
    %c0_15 = arith.constant 0 : index
    %c0_16 = arith.constant 0 : index
    %15 = vector.load %arg2[%c1, %c0_15, %c0_16] : memref<9x4x128xbf16, #tpu.memory_space<vmem>>, vector<1x4x128xbf16>
    %16 = vector.shape_cast %15 : vector<1x4x128xbf16> to vector<4x128xbf16>
    %cst_17 = arith.constant dense<0.000000e+00> : vector<256x128xf32>
    %17 = tpu.matmul %14, %16, %cst_17 {dimension_numbers = #tpu.dot_dimension_numbers<[1], [0], [0], [1], [0, 0, 1, 1], [], []>} : vector<256x4xbf16>, vector<4x128xbf16>, vector<256x128xf32> -> vector<256x128xf32>
    %18 = arith.addf %13, %17 : vector<256x128xf32>
    %c0_18 = arith.constant 0 : index
    %c0_19 = arith.constant 0 : index
    %19 = vector.load %arg5[%c0_18, %c0_19] : memref<256x128xf32, #tpu.memory_space<vmem>>, vector<256x128xf32>
    tpu.vector_store %arg5[%c0_18, %c0_19], %18 {strides = array<i32>} : memref<256x128xf32, #tpu.memory_space<vmem>>, vector<256x128xf32>,
    %20 = vector.extract_strided_slice %1 {offsets = [0, 2, 0], sizes = [16, 16, 4], strides = [1, 1, 1]} : vector<18x18x4xbf16> to vector<16x16x4xbf16>
    %c0_20 = arith.constant 0 : index
    %c0_21 = arith.constant 0 : index
    %21 = vector.load %arg5[%c0_20, %c0_21] : memref<256x128xf32, #tpu.memory_space<vmem>>, vector<256x128xf32>
    %22 = vector.shape_cast %20 : vector<16x16x4xbf16> to vector<256x4xbf16>
    %c2 = arith.constant 2 : index
    %c0_22 = arith.constant 0 : index
    %c0_23 = arith.constant 0 : index
    %23 = vector.load %arg2[%c2, %c0_22, %c0_23] : memref<9x4x128xbf16, #tpu.memory_space<vmem>>, vector<1x4x128xbf16>
    %24 = vector.shape_cast %23 : vector<1x4x128xbf16> to vector<4x128xbf16>
    %cst_24 = arith.constant dense<0.000000e+00> : vector<256x128xf32>
    %25 = tpu.matmul %22, %24, %cst_24 {dimension_numbers = #tpu.dot_dimension_numbers<[1], [0], [0], [1], [0, 0, 1, 1], [], []>} : vector<256x4xbf16>, vector<4x128xbf16>, vector<256x128xf32> -> vector<256x128xf32>
    %26 = arith.addf %21, %25 : vector<256x128xf32>
    %c0_25 = arith.constant 0 : index
    %c0_26 = arith.constant 0 : index
    %27 = vector.load %arg5[%c0_25, %c0_26] : memref<256x128xf32, #tpu.memory_space<vmem>>, vector<256x128xf32>
    tpu.vector_store %arg5[%c0_25, %c0_26], %26 {strides = array<i32>} : memref<256x128xf32, #tpu.memory_space<vmem>>, vector<256x128xf32>,
    %28 = vector.extract_strided_slice %1 {offsets = [1, 0, 0], sizes = [16, 16, 4], strides = [1, 1, 1]} : vector<18x18x4xbf16> to vector<16x16x4xbf16>
    %c0_27 = arith.constant 0 : index
    %c0_28 = arith.constant 0 : index
    %29 = vector.load %arg5[%c0_27, %c0_28] : memref<256x128xf32, #tpu.memory_space<vmem>>, vector<256x128xf32>
    %30 = vector.shape_cast %28 : vector<16x16x4xbf16> to vector<256x4xbf16>
    %c3 = arith.constant 3 : index
    %c0_29 = arith.constant 0 : index
    %c0_30 = arith.constant 0 : index
    %31 = vector.load %arg2[%c3, %c0_29, %c0_30] : memref<9x4x128xbf16, #tpu.memory_space<vmem>>, vector<1x4x128xbf16>
    %32 = vector.shape_cast %31 : vector<1x4x128xbf16> to vector<4x128xbf16>
    %cst_31 = arith.constant dense<0.000000e+00> : vector<256x128xf32>
    %33 = tpu.matmul %30, %32, %cst_31 {dimension_numbers = #tpu.dot_dimension_numbers<[1], [0], [0], [1], [0, 0, 1, 1], [], []>} : vector<256x4xbf16>, vector<4x128xbf16>, vector<256x128xf32> -> vector<256x128xf32>
    %34 = arith.addf %29, %33 : vector<256x128xf32>
    %c0_32 = arith.constant 0 : index
    %c0_33 = arith.constant 0 : index
    %35 = vector.load %arg5[%c0_32, %c0_33] : memref<256x128xf32, #tpu.memory_space<vmem>>, vector<256x128xf32>
    tpu.vector_store %arg5[%c0_32, %c0_33], %34 {strides = array<i32>} : memref<256x128xf32, #tpu.memory_space<vmem>>, vector<256x128xf32>,
    %36 = vector.extract_strided_slice %1 {offsets = [1, 1, 0], sizes = [16, 16, 4], strides = [1, 1, 1]} : vector<18x18x4xbf16> to vector<16x16x4xbf16>
    %c0_34 = arith.constant 0 : index
    %c0_35 = arith.constant 0 : index
    %37 = vector.load %arg5[%c0_34, %c0_35] : memref<256x128xf32, #tpu.memory_space<vmem>>, vector<256x128xf32>
    %38 = vector.shape_cast %36 : vector<16x16x4xbf16> to vector<256x4xbf16>
    %c4 = arith.constant 4 : index
    %c0_36 = arith.constant 0 : index
    %c0_37 = arith.constant 0 : index
    %39 = vector.load %arg2[%c4, %c0_36, %c0_37] : memref<9x4x128xbf16, #tpu.memory_space<vmem>>, vector<1x4x128xbf16>
    %40 = vector.shape_cast %39 : vector<1x4x128xbf16> to vector<4x128xbf16>
    %cst_38 = arith.constant dense<0.000000e+00> : vector<256x128xf32>
    %41 = tpu.matmul %38, %40, %cst_38 {dimension_numbers = #tpu.dot_dimension_numbers<[1], [0], [0], [1], [0, 0, 1, 1], [], []>} : vector<256x4xbf16>, vector<4x128xbf16>, vector<256x128xf32> -> vector<256x128xf32>
    %42 = arith.addf %37, %41 : vector<256x128xf32>
    %c0_39 = arith.constant 0 : index
    %c0_40 = arith.constant 0 : index
    %43 = vector.load %arg5[%c0_39, %c0_40] : memref<256x128xf32, #tpu.memory_space<vmem>>, vector<256x128xf32>
    tpu.vector_store %arg5[%c0_39, %c0_40], %42 {strides = array<i32>} : memref<256x128xf32, #tpu.memory_space<vmem>>, vector<256x128xf32>,
    %44 = vector.extract_strided_slice %1 {offsets = [1, 2, 0], sizes = [16, 16, 4], strides = [1, 1, 1]} : vector<18x18x4xbf16> to vector<16x16x4xbf16>
    %c0_41 = arith.constant 0 : index
    %c0_42 = arith.constant 0 : index
    %45 = vector.load %arg5[%c0_41, %c0_42] : memref<256x128xf32, #tpu.memory_space<vmem>>, vector<256x128xf32>
    %46 = vector.shape_cast %44 : vector<16x16x4xbf16> to vector<256x4xbf16>
    %c5 = arith.constant 5 : index
    %c0_43 = arith.constant 0 : index
    %c0_44 = arith.constant 0 : index
    %47 = vector.load %arg2[%c5, %c0_43, %c0_44] : memref<9x4x128xbf16, #tpu.memory_space<vmem>>, vector<1x4x128xbf16>
    %48 = vector.shape_cast %47 : vector<1x4x128xbf16> to vector<4x128xbf16>
    %cst_45 = arith.constant dense<0.000000e+00> : vector<256x128xf32>
    %49 = tpu.matmul %46, %48, %cst_45 {dimension_numbers = #tpu.dot_dimension_numbers<[1], [0], [0], [1], [0, 0, 1, 1], [], []>} : vector<256x4xbf16>, vector<4x128xbf16>, vector<256x128xf32> -> vector<256x128xf32>
    %50 = arith.addf %45, %49 : vector<256x128xf32>
    %c0_46 = arith.constant 0 : index
    %c0_47 = arith.constant 0 : index
    %51 = vector.load %arg5[%c0_46, %c0_47] : memref<256x128xf32, #tpu.memory_space<vmem>>, vector<256x128xf32>
    tpu.vector_store %arg5[%c0_46, %c0_47], %50 {strides = array<i32>} : memref<256x128xf32, #tpu.memory_space<vmem>>, vector<256x128xf32>,
    %52 = vector.extract_strided_slice %1 {offsets = [2, 0, 0], sizes = [16, 16, 4], strides = [1, 1, 1]} : vector<18x18x4xbf16> to vector<16x16x4xbf16>
    %c0_48 = arith.constant 0 : index
    %c0_49 = arith.constant 0 : index
    %53 = vector.load %arg5[%c0_48, %c0_49] : memref<256x128xf32, #tpu.memory_space<vmem>>, vector<256x128xf32>
    %54 = vector.shape_cast %52 : vector<16x16x4xbf16> to vector<256x4xbf16>
    %c6 = arith.constant 6 : index
    %c0_50 = arith.constant 0 : index
    %c0_51 = arith.constant 0 : index
    %55 = vector.load %arg2[%c6, %c0_50, %c0_51] : memref<9x4x128xbf16, #tpu.memory_space<vmem>>, vector<1x4x128xbf16>
    %56 = vector.shape_cast %55 : vector<1x4x128xbf16> to vector<4x128xbf16>
    %cst_52 = arith.constant dense<0.000000e+00> : vector<256x128xf32>
    %57 = tpu.matmul %54, %56, %cst_52 {dimension_numbers = #tpu.dot_dimension_numbers<[1], [0], [0], [1], [0, 0, 1, 1], [], []>} : vector<256x4xbf16>, vector<4x128xbf16>, vector<256x128xf32> -> vector<256x128xf32>
    %58 = arith.addf %53, %57 : vector<256x128xf32>
    %c0_53 = arith.constant 0 : index
    %c0_54 = arith.constant 0 : index
    %59 = vector.load %arg5[%c0_53, %c0_54] : memref<256x128xf32, #tpu.memory_space<vmem>>, vector<256x128xf32>
    tpu.vector_store %arg5[%c0_53, %c0_54], %58 {strides = array<i32>} : memref<256x128xf32, #tpu.memory_space<vmem>>, vector<256x128xf32>,
    %60 = vector.extract_strided_slice %1 {offsets = [2, 1, 0], sizes = [16, 16, 4], strides = [1, 1, 1]} : vector<18x18x4xbf16> to vector<16x16x4xbf16>
    %c0_55 = arith.constant 0 : index
    %c0_56 = arith.constant 0 : index
    %61 = vector.load %arg5[%c0_55, %c0_56] : memref<256x128xf32, #tpu.memory_space<vmem>>, vector<256x128xf32>
    %62 = vector.shape_cast %60 : vector<16x16x4xbf16> to vector<256x4xbf16>
    %c7 = arith.constant 7 : index
    %c0_57 = arith.constant 0 : index
    %c0_58 = arith.constant 0 : index
    %63 = vector.load %arg2[%c7, %c0_57, %c0_58] : memref<9x4x128xbf16, #tpu.memory_space<vmem>>, vector<1x4x128xbf16>
    %64 = vector.shape_cast %63 : vector<1x4x128xbf16> to vector<4x128xbf16>
    %cst_59 = arith.constant dense<0.000000e+00> : vector<256x128xf32>
    %65 = tpu.matmul %62, %64, %cst_59 {dimension_numbers = #tpu.dot_dimension_numbers<[1], [0], [0], [1], [0, 0, 1, 1], [], []>} : vector<256x4xbf16>, vector<4x128xbf16>, vector<256x128xf32> -> vector<256x128xf32>
    %66 = arith.addf %61, %65 : vector<256x128xf32>
    %c0_60 = arith.constant 0 : index
    %c0_61 = arith.constant 0 : index
    %67 = vector.load %arg5[%c0_60, %c0_61] : memref<256x128xf32, #tpu.memory_space<vmem>>, vector<256x128xf32>
    tpu.vector_store %arg5[%c0_60, %c0_61], %66 {strides = array<i32>} : memref<256x128xf32, #tpu.memory_space<vmem>>, vector<256x128xf32>,
    %68 = vector.extract_strided_slice %1 {offsets = [2, 2, 0], sizes = [16, 16, 4], strides = [1, 1, 1]} : vector<18x18x4xbf16> to vector<16x16x4xbf16>
    %c0_62 = arith.constant 0 : index
    %c0_63 = arith.constant 0 : index
    %69 = vector.load %arg5[%c0_62, %c0_63] : memref<256x128xf32, #tpu.memory_space<vmem>>, vector<256x128xf32>
    %70 = vector.shape_cast %68 : vector<16x16x4xbf16> to vector<256x4xbf16>
    %c8 = arith.constant 8 : index
    %c0_64 = arith.constant 0 : index
    %c0_65 = arith.constant 0 : index
    %71 = vector.load %arg2[%c8, %c0_64, %c0_65] : memref<9x4x128xbf16, #tpu.memory_space<vmem>>, vector<1x4x128xbf16>
    %72 = vector.shape_cast %71 : vector<1x4x128xbf16> to vector<4x128xbf16>
    %cst_66 = arith.constant dense<0.000000e+00> : vector<256x128xf32>
    %73 = tpu.matmul %70, %72, %cst_66 {dimension_numbers = #tpu.dot_dimension_numbers<[1], [0], [0], [1], [0, 0, 1, 1], [], []>} : vector<256x4xbf16>, vector<4x128xbf16>, vector<256x128xf32> -> vector<256x128xf32>
    %74 = arith.addf %69, %73 : vector<256x128xf32>
    %c0_67 = arith.constant 0 : index
    %c0_68 = arith.constant 0 : index
    %75 = vector.load %arg5[%c0_67, %c0_68] : memref<256x128xf32, #tpu.memory_space<vmem>>, vector<256x128xf32>
    tpu.vector_store %arg5[%c0_67, %c0_68], %74 {strides = array<i32>} : memref<256x128xf32, #tpu.memory_space<vmem>>, vector<256x128xf32>,
    %c0_69 = arith.constant 0 : index
    %c0_70 = arith.constant 0 : index
    %76 = vector.load %arg5[%c0_69, %c0_70] : memref<256x128xf32, #tpu.memory_space<vmem>>, vector<256x128xf32>
    %c0_71 = arith.constant 0 : index
    %c0_72 = arith.constant 0 : index
    %77 = vector.load %arg3[%c0_71, %c0_72] : memref<1x128xf32, #tpu.memory_space<vmem>>, vector<1x128xf32>
    %78 = vector.broadcast %77 : vector<1x128xf32> to vector<256x128xf32>
    %79 = arith.addf %76, %78 : vector<256x128xf32>
    %80 = arith.negf %79 : vector<256x128xf32>
    %81 = math.exp %80 : vector<256x128xf32>
    %cst_73 = arith.constant 1.000000e+00 : f32
    %82 = vector.broadcast %cst_73 : f32 to vector<256x128xf32>
    %83 = arith.addf %82, %81 : vector<256x128xf32>
    %84 = arith.divf %82, %83 : vector<256x128xf32>
    %85 = arith.mulf %79, %84 : vector<256x128xf32>
    %c0_74 = arith.constant 0 : index
    %c0_75 = arith.constant 0 : index
    %c0_76 = arith.constant 0 : index
    %86 = vector.load %arg4[%c0_74, %c0_75, %c0_76] : memref<1x256x128xf32, #tpu.memory_space<vmem>>, vector<1x256x128xf32>
    %87 = vector.shape_cast %86 : vector<1x256x128xf32> to vector<256x128xf32>
    %88 = vector.shape_cast %85 : vector<256x128xf32> to vector<1x256x128xf32>
    tpu.vector_store %arg4[%c0_74, %c0_75, %c0_76], %88 {strides = array<i32>} : memref<1x256x128xf32, #tpu.memory_space<vmem>>, vector<1x256x128xf32>,
    return
  }
  func.func @transform_0(%arg0: i32) -> (i32, i32, i32, i32) {
    %c0_i32 = arith.constant 0 : i32
    %c0_i32_0 = arith.constant 0 : i32
    %c0_i32_1 = arith.constant 0 : i32
    %c0_i32_2 = arith.constant 0 : i32
    return %arg0, %c0_i32, %c0_i32_0, %c0_i32_1 : i32, i32, i32, i32
  }
  func.func @transform_1(%arg0: i32) -> (i32, i32, i32) {
    %c0_i32 = arith.constant 0 : i32
    %c0_i32_0 = arith.constant 0 : i32
    %c0_i32_1 = arith.constant 0 : i32
    %c0_i32_2 = arith.constant 0 : i32
    return %c0_i32, %c0_i32_0, %c0_i32_1 : i32, i32, i32
  }
  func.func @transform_2(%arg0: i32) -> (i32, i32) {
    %c0_i32 = arith.constant 0 : i32
    %c0_i32_0 = arith.constant 0 : i32
    %c0_i32_1 = arith.constant 0 : i32
    return %c0_i32, %c0_i32_0 : i32, i32
  }
  func.func @transform_3(%arg0: i32) -> (i32, i32, i32) {
    %c0_i32 = arith.constant 0 : i32
    %c0_i32_0 = arith.constant 0 : i32
    %c0_i32_1 = arith.constant 0 : i32
    return %arg0, %c0_i32, %c0_i32_0 : i32, i32, i32
  }
}

</mosaic_0001>

<bundles_post_ra>
// kernel: tpu_custom_call.1
= control target key start
LH: loop header
LB: loop body
LE: loop exit
PB: predicated region body
PF: predicated region fallthrough
CT: control target
= control target key end

     0   :  { %8 = vsyncpa [#allocation4], 0  ;;  %s6639_s0 = inlined_call_operand.vmem [shape: bf16[2,18,18,4], index: 0, kind: input, shape index: {}]   ;;  %s6640_s1 = inlined_call_operand.vmem [shape: bf16[9,4,128], index: 1, kind: input, shape index: {}]   ;;  %s6641_s2 = inlined_call_operand.vmem [shape: f32[1,128], index: 2, kind: input, shape index: {}]   ;;  %s6642_s3 = inlined_call_operand.hbm [shape: f32[2,256,128], index: 3, kind: output, shape index: {}]  }
   0x1   :  { %10 = vsyncpa [#allocation4 + $0x1], 0  ;;  %s5232_s12 = smov 0   ;;  %s5234_s13 = smov 0  }
   0x2   :  { %s5236_s14 = smov 0   ;;  %s5238_s15 = smov 0  }
   0x3 LB: > { %s5253_s16 = sadd.s32 4294967295, %s5207_s15   ;;  %s3960_s17 = sadd.s32 4294967294, %s5207_s15   ;;  %s5207_s15 = sphi %s5238_s15, %s6775_s15   ;;  %s5203_s14 = sphi %s5236_s14, %s6774_s14   ;;  %s5199_s13 = sphi %s5234_s13, %s6773_s13   ;;  %s5195_s12 = sphi %s5232_s12, %s6772_s12  }
   0x4   : > { %s5257_s18 = sadd.s32 1, %s5207_s15   ;;  %s91_s19 = sadd.s32 1, %s5203_s14 }
   0x5   : > { %s88_s20 = ssub.s32 %s5207_s15, %s5257_s18  ;;  %p101_p0 = scmp.ne.s32.totalorder %s5203_s14, %s5199_s13 }
   0x6   : > { %p89_p1 = scmp.eq.s32.totalorder %s88_s20, 0  ;;  %p102_p2 = scmp.eq.s32.totalorder %s5253_s16, 1 }
   0x7   : > { %p107_p3 = scmp.ne.s32.totalorder %s5199_s13, %s5195_s12  ;;  %p108_p4 = scmp.eq.s32.totalorder %s3960_s17, 1 }
   0x8   : > { %s5268_s21 = scalar_select %p89_p1, %s5203_s14, %s91_s19  }
   0x9   : > { %p5270_p5 = por %p102_p2, %p101_p0  ;;  %p5274_p6 = por %p108_p4, %p107_p3 }
   0xa   : > { %p3963_p7 = scmp.ge.s32.totalorder %s5207_s15, 1  ;;  %p140_p8 = scmp.lt.s32.totalorder %s5207_s15, 3 }
   0xc   : > { %p141_p9 = pnand %p3963_p7, %p140_p8 }
   0xe   : > { %144 = sbr.rel (%p141_p9) target bundleno = 596 (0x254), region = 32 }
  0x15   : > { %v288_v0 = vld [vmem:[%s6640_s1] sm:$0x3]  ;;  %vm418_vm0 = vcmask 1041408   ;;  %p164_p10 = scmp.lt.s32.totalorder %s5253_s16, 1  ;;  %v4098_v2 = vld [vmem:[%s6640_s1 + $0x8] sm:$0x3] }
  0x16   : > { %4946 = vmatprep.subr.msk.bf16.mxu1 %vm418_vm0, %v288_v0  ;;  %v420_v1 = vsel %vm418_vm0, %v288_v0, 0  ;;  %v3998_v3 = vld [vmem:[%s6640_s1 + $0x2] sm:$0x3]  ;;  %4950 = vmatprep.subr.msk.bf16.mxu0 %vm418_vm0, %v4098_v2  ;;  %v5295_v4 = vsel %vm418_vm0, %v4098_v2, 0  ;;  %v4117_v5 = vld [vmem:[%s6640_s1 + $0xa] sm:$0x3] }
  0x17   : > { %4383 = vmatpush3.bf16.msra.mxu1 %v420_v1  ;;  %s165_s30 = scalar_select %p164_p10, %s5253_s16, 1  ;;  %6691 = vst [vmem:[#allocation6_spill] sm:$0xff] %v5295_v4  ;;  %4519 = vmatpush3.bf16.msra.mxu0 %v5295_v4  ;;  %vm369_vm1 = vcmask 31744   ;;  %v1165_v13 = vsel %vm418_vm0, %v3998_v3, 0  ;;  %v5337_v15 = vld [vmem:[%s6640_s1 + $0x4] sm:$0x3] }
  0x18   : > { %4947 = vmatprep.subr.msk.bf16.mxu1 %vm418_vm0, %v3998_v3  ;;  %4952 = vmatprep.subr.msk.bf16.mxu0 %vm418_vm0, %v4117_v5  ;;  %vm679_vm2 = vsmask.f32 3328  ;;  %vm680_vm3 = vsmask.f32 7440  ;;  %v5359_v22 = vsel %vm418_vm0, %v4117_v5, 0  ;;  %vm1440_vm5 = vcmask 1042432  }
  0x19   : > { %s4956_s6 = smul.u32 216, %s165_s30  ;;  %vm5399_vm4 = vmor %vm679_vm2, %vm680_vm3  ;;  %vm1441_vm6 = vcmask 1046532   ;;  %s5209_s24 = smov [#allocation3]  }
  0x1a   : > { %vm5610_vm7 = vmor %vm1440_vm5, %vm1441_vm6  ;;  %s5149_s25 = sshll.u32 %s5209_s24, 4  ;;  %s5150_s25 = int_to_ptr.vmem [resolvable:$false] %s5149_s25 }
  0x1b   : > { %s5306_s9 = scalar_lea.vmem %s6639_s0, %s4956_s6  ;;  %s161_s6 = sand.u32 1, %s5199_s13  }
  0x1c   : > { %v5309_v6 = vld [vmem:[%s5306_s9] sm:$0xf]  ;;  %v5312_v7 = vld [vmem:[%s5306_s9 + $0x4] sm:$0xf]  ;;  %v5315_v8 = vld [vmem:[%s5306_s9 + $0xc] sm:$0xf] }
  0x1d   : > { %v3966_v9 = vcombine.low %v5309_v6, %v5312_v7  ;;  %v5320_v10 = vld [vmem:[%s5306_s9 + $0x10] sm:$0xf]  ;;  %v5327_v12 = vld [vmem:[%s5306_s9 + $0x18] sm:$0xf]  ;;  %v5332_v14 = vld [vmem:[%s5306_s9 + $0x1c] sm:$0xf] }
  0x1e   : > { %v5324_v11 = vcombine.low %v5315_v8, %v5320_v10  ;;  %v5343_v16 = vcombine.low %v5327_v12, %v5332_v14  ;;  %v731_v17 = vshrl.u32 %v5327_v12, 16  ;;  %v5347_v18 = vld [vmem:[%s5306_s9 + $0x24] sm:$0xf]  ;;  %v5350_v19 = vld [vmem:[%s5306_s9 + $0x28] sm:$0xf]  ;;  %v734_v20 = vshll.u32 %v5327_v12, 16 }
  0x1f   : > { %4384 = vmatprep.mubr.msk.bf16.mxu1 %vm369_vm1, %v3966_v9  ;;  %v5356_v21 = vld [vmem:[%s5306_s9 + $0x14] sm:$0x1]  ;;  %v744_v25 = vshrl.u32 %v5332_v14, 16  ;;  %v707_v26 = vshrl.u32 %v5315_v8, 16  ;;  %v5369_v27 = vcombine.low %v5347_v18, %v5350_v19  ;;  %v710_v28 = vshll.u32 %v5315_v8, 16  ;;  %s6404_s7 = sshll.u32 %s161_s6, 8 }
  0x20   : > { %6692 = vst [vmem:[#allocation7_spill] sm:$0xff] %v5324_v11  ;;  %4385 = vmatmul.mubr.msk.bf16.vlgmr.msra.gmra.mrb[0].mxu1 %vm369_vm1, %v5324_v11  ;;  %6693 = vst [vmem:[#allocation8_spill] sm:$0xff] %v5343_v16  ;;  %v716_v29 = vshll.u32 %v5320_v10, 16  ;;  %v720_v30 = vshrl.u32 %v5320_v10, 16  ;;  %v5375_v31 = vld [vmem:[%s5306_s9 + $0x20] sm:$0x1] }
  0x21   : > { %4417 = vmatpush3.bf16.msra.mxu1 %v1165_v13  ;;  %4388 = vmatprep.mubr.msk.bf16.mxu1 %vm369_vm1, %v5343_v16  ;;  %6694 = vst [vmem:[#allocation9_spill] sm:$0xff] %v5369_v27  ;;  %v755_v32 = vshrl.u32 %v5347_v18, 16  ;;  %v709_v33 = vrot.slane %v707_v26, 4  ;;  %v726_v34 = vshll.u32 %v5356_v21, 16  ;;  %v733_v35 = vrot.slane %v731_v17, 4  ;;  %s6435_s8 = scalar_lea.vmem [#allocation3], %s6404_s7 }
  0x22   : > { %4948 = vmatprep.subr.msk.bf16.mxu1 %vm418_vm0, %v5337_v15  ;;  %v712_v36 = vrot.slane %v710_v28, 5  ;;  %v718_v37 = vrot.slane %v716_v29, 5  ;;  %v722_v38 = vrot.slane %v720_v30, 4  ;;  %v736_v39 = vrot.slane %v734_v20, 5  ;;  %v5380_v40 = vld [vmem:[%s5306_s9 + $0x30] sm:$0xf] }
  0x23   : > { %v758_v41 = vshll.u32 %v5347_v18, 16  ;;  %v740_v42 = vshll.u32 %v5332_v14, 16  ;;  %v746_v43 = vrot.slane %v744_v25, 4  ;;  %v750_v44 = vshll.u32 %v5375_v31, 16  ;;  %v5386_v45 = vld [vmem:[%s5306_s9 + $0x34] sm:$0xf] }
  0x24   : > { %v713_v46 = vor.u32 %v712_v36, %v709_v33  ;;  %v723_v47 = vor.u32 %v722_v38, %v718_v37  ;;  %v728_v48 = vrot.slane %v726_v34, 5  ;;  %v737_v49 = vor.u32 %v736_v39, %v733_v35  ;;  %v5391_v50 = vld [vmem:[%s5306_s9 + $0x3c] sm:$0xf]  ;;  %v5394_v51 = vld [vmem:[%s5306_s9 + $0x40] sm:$0xf]  ;;  %s3898_s10 = sshll.u32 %s6435_s8, 4  ;;  %s6590_s10 = int_to_ptr.vmem [resolvable:$true] %s3898_s10 }
  0x25   : > { %v768_v52 = vshrl.u32 %v5350_v19, 16  ;;  %v742_v54 = vrot.slane %v740_v42, 5  ;;  %v752_v55 = vrot.slane %v750_v44, 5  ;;  %v5405_v56 = vcombine.low %v5380_v40, %v5386_v45  ;;  %v5417_v1 = vld [vmem:[%s5306_s9 + $0x2c] sm:$0x1]  ;;  %s5145_s20 = scalar_lea.vmem %s6590_s10, 4096  ;;  %p5152_p0 = scmp.lt.s32.totalorder %s6590_s10, %s5150_s25 }
  0x26   : > { %v714_v57 = vrot.slane %v713_v46, 4  ;;  %v724_v58 = vrot.slane %v723_v47, 4  ;;  %v738_v59 = vrot.slane %v737_v49, 4  ;;  %v779_v60 = vshrl.u32 %v5380_v40, 16  ;;  %v5432_v33 = vld [vmem:[%s5306_s9 + $0x38] sm:$0x1]  ;;  %p5146_p11 = scmp.ne.s32.totalorder %s6590_s10, %s5145_s20 }
  0x27   : > { %6697 = vst [vmem:[#allocation10_spill] sm:$0xff] %v5405_v56  ;;  %v747_v61 = vor.u32 %v746_v43, %v742_v54  ;;  %v782_v62 = vshll.u32 %v5380_v40, 16  ;;  %v792_v63 = vshrl.u32 %v5386_v45, 16  ;;  %v5414_v0 = vcombine.low %v5391_v50, %v5394_v51  ;;  %v5445_v38 = vld [vmem:[%s6640_s1 + $0xc] sm:$0x3]  ;;  %s5151_s26 = scalar_lea.vmem %s5150_s25, 8192 }
  0x28   : > { %4389 = vmatmul.mubr.msk.bf16.gmra.mrb[4].mxu1 %vm369_vm1, %v5369_v27  ;;  %v719_v2 = vsel %vm5399_vm4, %v714_v57, %v718_v37  ;;  %v729_v3 = vsel %vm5399_vm4, %v724_v58, %v728_v48  ;;  %v743_v5 = vsel %vm5399_vm4, %v738_v59, %v742_v54  ;;  %v803_v9 = vshrl.u32 %v5391_v50, 16  ;;  %v5440_v37 = vld [vmem:[%s5306_s9 + $0x48] sm:$0xf]  ;;  %v5453_v44 = vld [vmem:[%s5306_s9 + $0x4c] sm:$0xf]  ;;  %p5147_p12 = pnand %p5146_p11, %p5270_p5  ;;  %p5153_p1 = scmp.lt.s32.totalorder %s5151_s26, %s5145_s20 }
  0x29   : > { %4392 = vmatprep.mubr.msk.bf16.mxu1 %vm369_vm1, %v5405_v56  ;;  %6698 = vst [vmem:[#allocation11_spill] sm:$0xff] %v5414_v0  ;;  %v5426_v13 = vcombine.low %v719_v2, %v729_v3  ;;  %v748_v17 = vrot.slane %v747_v61, 4  ;;  %v806_v20 = vshll.u32 %v5391_v50, 16  ;;  %v757_v25 = vrot.slane %v755_v32, 4  ;;  %v5456_v46 = vld [vmem:[%s5306_s9 + $0x54] sm:$0xf] }
  0x2a   : > { %v760_v26 = vrot.slane %v758_v41, 5  ;;  %v764_v28 = vshll.u32 %v5350_v19, 16  ;;  %v770_v29 = vrot.slane %v768_v52, 4  ;;  %v774_v30 = vshll.u32 %v5417_v1, 16  ;;  %v5460_v54 = vld [vmem:[%s5306_s9 + $0x58] sm:$0xf]  ;;  %p5148_p13 = pneg %p5147_p12  ;;  %p5154_p2 = por %p5153_p1, %p5152_p0 }
  0x2b   : > { %4520 = vmatprep.mubr.msk.bf16.mxu0 %vm369_vm1, %v5426_v13  ;;  %v753_v34 = vsel %vm5399_vm4, %v748_v17, %v752_v55  ;;  %v781_v35 = vrot.slane %v779_v60, 4  ;;  %v784_v36 = vrot.slane %v782_v62, 5  ;;  %v788_v32 = vshll.u32 %v5386_v45, 16 }
  0x2c   : > { %v5447_v39 = vcombine.low %v743_v5, %v753_v34  ;;  %v816_v41 = vshrl.u32 %v5394_v51, 16  ;;  %v761_v42 = vor.u32 %v760_v26, %v757_v25  ;;  %v766_v43 = vrot.slane %v764_v28, 5  ;;  %p5155_p3 = pnand %p5154_p2, %p5148_p13 }
  0x2d   : > { %v785_v47 = vor.u32 %v784_v36, %v781_v35  ;;  %v790_v48 = vrot.slane %v788_v32, 5  ;;  %v794_v49 = vrot.slane %v792_v63, 4  ;;  %v798_v52 = vshll.u32 %v5432_v33, 16 }
  0x2e   : > { %6699 = vst [vmem:[#allocation12_spill] sm:$0xff] %v5447_v39  ;;  %4521 = vmatmul.mubr.msk.bf16.vlgmr.msra.gmra.mrb[0].mxu0 %vm369_vm1, %v5447_v39  ;;  %v762_v55 = vrot.slane %v761_v42, 4  ;;  %v771_v57 = vor.u32 %v770_v29, %v766_v43  ;;  %v776_v58 = vrot.slane %v774_v30, 5  ;;  %v5466_v59 = vcombine.low %v5440_v37, %v5453_v44  ;;  %v5486_v29 = vld [vmem:[%s5306_s9 + $0x44] sm:$0x1] }
  0x2f   : > { %4553 = vmatpush3.bf16.msra.mxu0 %v5359_v22  ;;  %v786_v60 = vrot.slane %v785_v47, 4  ;;  %v795_v61 = vor.u32 %v794_v49, %v790_v48  ;;  %v800_v62 = vrot.slane %v798_v52, 5  ;;  %v827_v63 = vshrl.u32 %v5440_v37, 16 }
  0x30   : > { %4393 = vmatmul.mubr.msk.bf16.gmra.mrb[8].mxu1 %vm369_vm1, %v5414_v0  ;;  %6700 = vst [vmem:[#allocation13_spill] sm:$0xff] %v5466_v59  ;;  %v767_v2 = vsel %vm5399_vm4, %v762_v55, %v766_v43  ;;  %v772_v3 = vrot.slane %v771_v57, 4  ;;  %v830_v5 = vshll.u32 %v5440_v37, 16  ;;  %v5477_v17 = vcombine.low %v5456_v46, %v5460_v54  ;;  %4953 = vmatprep.subr.msk.bf16.mxu0 %vm418_vm0, %v5445_v38  ;;  %v5505_v55 = vld [vmem:[%s5306_s9 + $0x60] sm:$0xf] }
  0x31   : > { %4396 = vmatprep.mubr.msk.bf16.mxu1 %vm369_vm1, %v5466_v59  ;;  %v791_v22 = vsel %vm5399_vm4, %v786_v60, %v790_v48  ;;  %v796_v25 = vrot.slane %v795_v61, 4  ;;  %v840_v26 = vshrl.u32 %v5453_v44, 16  ;;  %v851_v28 = vshrl.u32 %v5456_v46, 16  ;;  %v5497_v48 = vld [vmem:[%s5306_s9 + $0x50] sm:$0x1] }
  0x32   : > { %6701 = vst [vmem:[#allocation14_spill] sm:$0xff] %v5477_v17  ;;  %v777_v30 = vsel %vm5399_vm4, %v772_v3, %v776_v58  ;;  %v854_v34 = vshll.u32 %v5456_v46, 16  ;;  %v805_v35 = vrot.slane %v803_v9, 4  ;;  %v808_v36 = vrot.slane %v806_v20, 5  ;;  %v5508_v57 = vld [vmem:[%s5306_s9 + $0x64] sm:$0xf] }
  0x33   : > { %v5491_v32 = vcombine.low %v767_v2, %v777_v30  ;;  %v801_v42 = vsel %vm5399_vm4, %v796_v25, %v800_v62  ;;  %v812_v43 = vshll.u32 %v5394_v51, 16  ;;  %v818_v47 = vrot.slane %v816_v41, 4  ;;  %v5514_v62 = vld [vmem:[%s5306_s9 + $0x6c] sm:$0xf]  ;;  %v5525_v25 = vld [vmem:[%s5306_s9 + $0x70] sm:$0xf] }
  0x34   : > { %v5499_v49 = vcombine.low %v791_v22, %v801_v42  ;;  %v809_v52 = vor.u32 %v808_v36, %v805_v35  ;;  %v822_v9 = vshll.u32 %v5486_v29, 16  ;;  %v829_v20 = vrot.slane %v827_v63, 4  ;;  %v5578_v59 = vld [vmem:[%s5306_s9 + $0x88] sm:$0xf] }
  0x35   : > { %4524 = vmatprep.mubr.msk.bf16.mxu0 %vm369_vm1, %v5491_v32  ;;  %v814_v41 = vrot.slane %v812_v43, 5  ;;  %v832_v58 = vrot.slane %v830_v5, 5  ;;  %v836_v60 = vshll.u32 %v5453_v44, 16  ;;  %v842_v61 = vrot.slane %v840_v26, 4 }
  0x36   : > { %4525 = vmatmul.mubr.msk.bf16.gmra.mrb[4].mxu0 %vm369_vm1, %v5499_v49  ;;  %v864_v2 = vshrl.u32 %v5460_v54, 16  ;;  %v810_v63 = vrot.slane %v809_v52, 4  ;;  %v846_v3 = vshll.u32 %v5497_v48, 16  ;;  %v5522_v22 = vcombine.low %v5505_v55, %v5508_v57 }
  0x37   : > { %v819_v5 = vor.u32 %v818_v47, %v814_v41  ;;  %v824_v30 = vrot.slane %v822_v9, 5  ;;  %v833_v26 = vor.u32 %v832_v58, %v829_v20  ;;  %v838_v35 = vrot.slane %v836_v60, 5  ;;  %v5538_v9 = vld [vmem:[%s5306_s9 + $0x5c] sm:$0x1] }
  0x38   : > { %4397 = vmatmul.mubr.msk.bf16.gmra.mrb[12].mxu1 %vm369_vm1, %v5477_v17  ;;  %6702 = vst [vmem:[#allocation15_spill] sm:$0xff] %v5522_v22  ;;  %v815_v36 = vsel %vm5399_vm4, %v810_v63, %v814_v41  ;;  %v848_v42 = vrot.slane %v846_v3, 5  ;;  %v875_v43 = vshrl.u32 %v5505_v55, 16  ;;  %v878_v52 = vshll.u32 %v5505_v55, 16  ;;  %v5554_v17 = vld [vmem:[%s5306_s9 + $0x68] sm:$0x1] }
  0x39   : > { %4400 = vmatprep.mubr.msk.bf16.mxu1 %vm369_vm1, %v5522_v22  ;;  %v820_v24 = vrot.slane %v819_v5, 4  ;;  %v834_v23 = vrot.slane %v833_v26, 4  ;;  %v843_v4 = vor.u32 %v842_v61, %v838_v35  ;;  %v5535_v47 = vcombine.low %v5514_v62, %v5525_v25 }
  0x3a   : > { %v692_v20 = vshll.u32 %v5312_v7, 16  ;;  %v696_v41 = vshrl.u32 %v5312_v7, 16  ;;  %v888_v58 = vshrl.u32 %v5508_v57, 16  ;;  %v853_v60 = vrot.slane %v851_v28, 4 }
  0x3b   : > { %6703 = vst [vmem:[#allocation16_spill] sm:$0xff] %v5535_v47  ;;  %v825_v63 = vsel %vm5399_vm4, %v820_v24, %v824_v30  ;;  %v839_v61 = vsel %vm5399_vm4, %v834_v23, %v838_v35  ;;  %v844_v3 = vrot.slane %v843_v4, 4  ;;  %v856_v5 = vrot.slane %v854_v34, 5  ;;  %v5559_v30 = vld [vmem:[%s5306_s9 + $0x78] sm:$0xf] }
  0x3c   : > { %v5547_v26 = vcombine.low %v815_v36, %v825_v63  ;;  %v860_v11 = vshll.u32 %v5460_v54, 16  ;;  %v866_v22 = vrot.slane %v864_v2, 4  ;;  %v870_v28 = vshll.u32 %v5538_v9, 16  ;;  %v5562_v35 = vld [vmem:[%s5306_s9 + $0x7c] sm:$0xf] }
  0x3d   : > { %v849_v24 = vsel %vm5399_vm4, %v844_v3, %v848_v42  ;;  %v857_v23 = vor.u32 %v856_v5, %v853_v60  ;;  %v877_v4 = vrot.slane %v875_v43, 4  ;;  %v880_v34 = vrot.slane %v878_v52, 5  ;;  %v5574_v3 = vld [vmem:[%s5306_s9 + $0x84] sm:$0xf] }
  0x3e   : > { %6704 = vst [vmem:[#allocation17_spill] sm:$0xff] %v5547_v26  ;;  %v6705_v36 = vshrl.u32 %v5309_v6, 16  ;;  %4528 = vmatprep.mubr.msk.bf16.mxu0 %vm369_vm1, %v5547_v26  ;;  %v5570_v2 = vcombine.low %v839_v61, %v849_v24  ;;  %v884_v42 = vshll.u32 %v5508_v57, 16  ;;  %v890_v60 = vrot.slane %v888_v58, 4 }
  0x3f   : > { %v858_v43 = vrot.slane %v857_v23, 4  ;;  %v881_v52 = vor.u32 %v880_v34, %v877_v4  ;;  %v894_v5 = vshll.u32 %v5554_v17, 16  ;;  %v872_v61 = vrot.slane %v870_v28, 5  ;;  %v5598_v28 = vld [vmem:[%s5306_s9 + $0x90] sm:$0xf] }
  0x40   : > { %4401 = vmatmul.mubr.msk.bf16.gmra.mrb[16].mxu1 %vm369_vm1, %v5535_v47  ;;  %v5566_v63 = vrot.slane %v6705_v36, 4  ;;  %6706 = vst [vmem:[#allocation18_spill] sm:$0xff] %v5570_v2  ;;  %v862_v47 = vrot.slane %v860_v11, 5  ;;  %4529 = vmatmul.mubr.msk.bf16.gmra.mrb[8].mxu0 %vm369_vm1, %v5570_v2  ;;  %v886_v24 = vrot.slane %v884_v42, 5  ;;  %v5584_v11 = vcombine.low %v5559_v30, %v5562_v35  ;;  %v5601_v42 = vld [vmem:[%s5306_s9 + $0x94] sm:$0xf] }
  0x41   : > { %v6708_v23 = vshll.u32 %v5309_v6, 16  ;;  %v1459_v58 = vrot.slane %v5332_v14, 5  ;;  %v882_v0 = vrot.slane %v881_v52, 4  ;;  %v896_v16 = vrot.slane %v894_v5, 5 }
  0x42   : > { %v867_v36 = vor.u32 %v866_v22, %v862_v47  ;;  %6707 = vst [vmem:[#allocation19_spill] sm:$0xff] %v5584_v11  ;;  %v863_v34 = vsel %vm5399_vm4, %v858_v43, %v862_v47  ;;  %v891_v27 = vor.u32 %v890_v60, %v886_v24  ;;  %4404 = vmatprep.mubr.msk.bf16.mxu1 %vm369_vm1, %v5584_v11  ;;  %v5603_v14 = vrot.slane %v692_v20, 5 }
  0x43   : > { %v688_v4 = vrot.slane %v6708_v23, 5  ;;  %v5595_v22 = vcombine.low %v5574_v3, %v5578_v59  ;;  %v698_v47 = vrot.slane %v696_v41, 4  ;;  %v1455_v43 = vrot.slane %v5356_v21, 5 }
  0x44   : > { %v868_v56 = vrot.slane %v867_v36, 4  ;;  %v887_v52 = vsel %vm5399_vm4, %v882_v0, %v886_v24  ;;  %v892_v36 = vrot.slane %v891_v27, 4  ;;  %v4032_v20 = vrot.slane %v5315_v8, 9  ;;  %v5631_v27 = vld [vmem:[%s5306_s9 + $0xa0] sm:$0xf] }
  0x45   : > { %6709 = vst [vmem:[#allocation20_spill] sm:$0xff] %v5595_v22  ;;  %v1452_v21 = vrot.slane %v5320_v10, 5  ;;  %v4033_v41 = vrot.slane %v5327_v12, 9  ;;  %v1461_v0 = vrot.slane %v1459_v58, 4  ;;  %v5625_v23 = vcombine.low %v5598_v28, %v5601_v42 }
  0x46   : > { %v873_v5 = vsel %vm5399_vm4, %v868_v56, %v872_v61  ;;  %v5628_v56 = vld [vmem:[%s5306_s9 + $0x9c] sm:$0xf]  ;;  %v1462_v61 = vrot.slane %v5375_v31, 5  ;;  %v897_v8 = vsel %vm5399_vm4, %v892_v36, %v896_v16  ;;  %v5653_v36 = vld [vmem:[%s5306_s9 + $0xa8] sm:$0xf] }
  0x47   : > { %v5621_v24 = vcombine.low %v863_v34, %v873_v5  ;;  %6713 = vst [vmem:[#allocation22_spill] sm:$0xff] %v5625_v23  ;;  %v1453_v10 = vsel %vm5610_vm7, %v4032_v20, %v1452_v21  ;;  %v1454_v12 = vrot.slane %v1452_v21, 4  ;;  %v5640_v34 = vcombine.low %v887_v52, %v897_v8  ;;  %v5656_v20 = vld [vmem:[%s5306_s9 + $0xac] sm:$0xf] }
  0x48   : > { %4405 = vmatmul.mubr.msk.bf16.gmra.mrb[20].mxu1 %vm369_vm1, %v5595_v22  ;;  %v689_v5 = vor.u32 %v688_v4, %v5566_v63  ;;  %v6663_v22 = vrot.slane %v5312_v7, 5  ;;  %v5650_v16 = vcombine.low %v5628_v56, %v5631_v27  ;;  %v699_v52 = vor.u32 %v698_v47, %v5603_v14 }
  0x49   : > { %6712 = vst [vmem:[#allocation21_spill] sm:$0xff] %v5621_v24  ;;  %4532 = vmatprep.mubr.msk.bf16.mxu0 %vm369_vm1, %v5621_v24  ;;  %6714 = vst [vmem:[#allocation23_spill] sm:$0xff] %v5640_v34  ;;  %4408 = vmatprep.mubr.msk.bf16.mxu1 %vm369_vm1, %v5625_v23  ;;  %v1456_v31 = vsel %vm5610_vm7, %v1454_v12, %v1455_v43  ;;  %v4034_v4 = vrot.slane %v5347_v18, 9  ;;  %v1466_v43 = vrot.slane %v5350_v19, 5  ;;  %v1469_v12 = vrot.slane %v5417_v1, 5 }
  0x4a   : > { %6715 = vst [vmem:[#allocation24_spill] sm:$0xff] %v5650_v16  ;;  %4533 = vmatmul.mubr.msk.bf16.gmra.mrb[12].mxu0 %vm369_vm1, %v5640_v34  ;;  %v5661_v63 = vcombine.low %v1453_v10, %v1456_v31  ;;  %v1460_v21 = vsel %vm5610_vm7, %v4033_v41, %v1459_v58  ;;  %v1463_v8 = vsel %vm5610_vm7, %v1461_v0, %v1462_v61  ;;  %v1473_v47 = vrot.slane %v5386_v45, 5  ;;  %v5689_v41 = vld [vmem:[%s5306_s9 + $0xb4] sm:$0xf]  ;;  %v5706_v58 = vld [vmem:[%s5306_s9 + $0x8] sm:$0x1] }
  0x4b   : > { %v1467_v18 = vsel %vm5610_vm7, %v4034_v4, %v1466_v43  ;;  %v1468_v10 = vrot.slane %v1466_v43, 4  ;;  %v5677_v19 = vcombine.low %v5653_v36, %v5656_v20  ;;  %v5682_v1 = vrot.slane %v6663_v22, 4 }
  0x4c   : > { %4554 = vmatprep.mubr.msk.bf16.mxu0 %vm369_vm1, %v5661_v63  ;;  %v2762_v45 = vsel %vm418_vm0, %v5445_v38, 0  ;;  %v5693_v0 = vsel %vm418_vm0, %v5337_v15, 0  ;;  %v690_v61 = vrot.slane %v689_v5, 4  ;;  %v5695_v31 = vcombine.low %v1460_v21, %v1463_v8  ;;  %v5703_v38 = vld [vmem:[%s5306_s9 + $0xb8] sm:$0xf] }
  0x4d   : > { %6716 = vst [vmem:[#allocation25_spill] sm:$0xff] %v5677_v19  ;;  %v1470_v4 = vsel %vm5610_vm7, %v1468_v10, %v1469_v12  ;;  %v4035_v43 = vrot.slane %v5380_v40, 9  ;;  %v700_v22 = vrot.slane %v699_v52, 4  ;;  %v1475_v15 = vrot.slane %v1473_v47, 4 }
  0x4e   : > { %v1476_v5 = vrot.slane %v5432_v33, 5  ;;  %v4036_v8 = vrot.slane %v5391_v50, 9  ;;  %v1480_v12 = vrot.slane %v5394_v51, 5  ;;  %v1483_v40 = vrot.slane %v5486_v29, 5  ;;  %v5725_v33 = vld [vmem:[%s6640_s1 + $0xe] sm:$0x3] }
  0x4f   : > { %v5719_v52 = vcombine.low %v5689_v41, %v5703_v38  ;;  %v1474_v29 = vsel %vm5610_vm7, %v4035_v43, %v1473_v47  ;;  %v1487_v10 = vrot.slane %v5453_v44, 5  ;;  %v695_v51 = vsel %vm5399_vm4, %v690_v61, %v5603_v14 }
  0x50   : > { %4409 = vmatmul.mubr.msk.bf16.gmra.mrb[24].mxu1 %vm369_vm1, %v5650_v16  ;;  %v5708_v16 = vcombine.low %v1467_v18, %v1470_v4  ;;  %v702_v18 = vshll.u32 %v5706_v58, 16  ;;  %v1482_v4 = vrot.slane %v1480_v12, 4  ;;  %v1481_v47 = vsel %vm5610_vm7, %v4036_v8, %v1480_v12 }
  0x51   : > { %4412 = vmatprep.mubr.msk.bf16.mxu1 %vm369_vm1, %v5677_v19  ;;  %6718 = vst [vmem:[#allocation27_spill] sm:$0xff] %v5719_v52  ;;  %v1477_v19 = vsel %vm5610_vm7, %v1475_v15, %v1476_v5  ;;  %v1494_v43 = vrot.slane %v5460_v54, 5  ;;  %v4037_v54 = vrot.slane %v5440_v37, 9  ;;  %v4038_v14 = vrot.slane %v5456_v46, 9  ;;  %v5790_v46 = vld [vmem:[%s5306_s9 + $0x80] sm:$0x1] }
  0x52   : > { %6717 = vst [vmem:[#allocation26_spill] sm:$0xff] %v5708_v16  ;;  %4555 = vmatmul.mubr.msk.bf16.vlgmr.msra.gmra.mrb[0].mxu0 %vm369_vm1, %v5695_v31  ;;  %v704_v50 = vrot.slane %v702_v18, 5  ;;  %v5757_v8 = vcombine.low %v1474_v29, %v1477_v19  ;;  %v1489_v18 = vrot.slane %v1487_v10, 4  ;;  %v1501_v19 = vrot.slane %v5508_v57, 5  ;;  %v5822_v15 = vld [vmem:[%s5306_s9 + $0x98] sm:$0x1] }
  0x53   : > { %4587 = vmatpush3.bf16.msra.mxu0 %v2762_v45  ;;  %4558 = vmatprep.mubr.msk.bf16.mxu0 %vm369_vm1, %v5708_v16  ;;  %v1484_v45 = vsel %vm5610_vm7, %v1482_v4, %v1483_v40  ;;  %v1490_v4 = vrot.slane %v5497_v48, 5  ;;  %v1496_v44 = vrot.slane %v1494_v43, 4  ;;  %v1488_v57 = vsel %vm5610_vm7, %v4037_v54, %v1487_v10  ;;  %v5800_v54 = vld [vmem:[%s6640_s1 + $0x6] sm:$0x3] }
  0x54   : > { %4954 = vmatprep.subr.msk.bf16.mxu0 %vm418_vm0, %v5725_v33  ;;  %v705_v61 = vsel %vm5399_vm4, %v700_v22, %v704_v50  ;;  %6719 = vst [vmem:[#allocation28_spill] sm:$0xff] %v5757_v8  ;;  %v5760_v40 = vcombine.low %v1481_v47, %v1484_v45  ;;  %v1497_v22 = vrot.slane %v5538_v9, 5  ;;  %v1508_v47 = vrot.slane %v5525_v25, 5 }
  0x55   : > { %v3999_v12 = vcombine.low %v695_v51, %v705_v61  ;;  %v1491_v45 = vsel %vm5610_vm7, %v1489_v18, %v1490_v4  ;;  %v1495_v61 = vsel %vm5610_vm7, %v4038_v14, %v1494_v43  ;;  %v1515_v9 = vrot.slane %v5562_v35, 5 }
  0x56   : > { %6720 = vst [vmem:[#allocation29_spill] sm:$0xff] %v5760_v40  ;;  %v1498_v29 = vsel %vm5610_vm7, %v1496_v44, %v1497_v22  ;;  %v4039_v48 = vrot.slane %v5505_v55, 9  ;;  %v1503_v51 = vrot.slane %v1501_v19, 4  ;;  %v1504_v10 = vrot.slane %v5554_v17, 5 }
  0x57   : > { %v4040_v14 = vrot.slane %v5514_v62, 9  ;;  %v4041_v44 = vrot.slane %v5559_v30, 9  ;;  %v1522_v55 = vrot.slane %v5578_v59, 5  ;;  %v5809_v17 = vcombine.low %v1488_v57, %v1491_v45 }
  0x58   : > { %4413 = vmatmul.mubr.msk.bf16.gmra.mrb[28].mxu1 %vm369_vm1, %v5719_v52  ;;  %v1510_v4 = vrot.slane %v1508_v47, 4  ;;  %v5818_v43 = vcombine.low %v1495_v61, %v1498_v29  ;;  %v1517_v50 = vrot.slane %v1515_v9, 4  ;;  %v1518_v37 = vrot.slane %v5790_v46, 5  ;;  %v5839_v52 = vld [vmem:[%s5306_s9 + $0xa4] sm:$0x1] }
  0x59   : > { %4418 = vmatprep.mubr.msk.bf16.mxu1 %vm369_vm1, %v3999_v12  ;;  %v5787_v12 = vld [vmem:[%s5306_s9 + $0x74] sm:$0x1]  ;;  %6721 = vst [vmem:[#allocation30_spill] sm:$0xff] %v5809_v17  ;;  %v1529_v57 = vrot.slane %v5601_v42, 5  ;;  %v1505_v18 = vsel %vm5610_vm7, %v1503_v51, %v1504_v10  ;;  %v1536_v29 = vrot.slane %v5631_v27, 5  ;;  %v1509_v61 = vsel %vm5610_vm7, %v4040_v14, %v1508_v47 }
  0x5a   : > { %4559 = vmatmul.mubr.msk.bf16.gmra.mrb[4].mxu0 %vm369_vm1, %v5757_v8  ;;  %v1511_v22 = vrot.slane %v5787_v12, 5  ;;  %6722 = vst [vmem:[#allocation31_spill] sm:$0xff] %v5818_v43  ;;  %v1516_v5 = vsel %vm5610_vm7, %v4041_v44, %v1515_v9  ;;  %v4042_v21 = vrot.slane %v5574_v3, 9  ;;  %v1532_v47 = vrot.slane %v5822_v15, 5 }
  0x5b   : > { %4562 = vmatprep.mubr.msk.bf16.mxu0 %vm369_vm1, %v5760_v40  ;;  %v1519_v9 = vsel %vm5610_vm7, %v1517_v50, %v1518_v37  ;;  %v1531_v10 = vrot.slane %v1529_v57, 4  ;;  %v4044_v14 = vrot.slane %v5628_v56, 9  ;;  %v1543_v44 = vrot.slane %v5656_v20, 5 }
  0x5c   : > { %v1538_v45 = vrot.slane %v1536_v29, 4  ;;  %v6723_v23 = vshrl.u32 %v5514_v62, 16  ;;  %v6724_v40 = vshll.u32 %v5514_v62, 16  ;;  %v1523_v50 = vsel %vm5610_vm7, %v4042_v21, %v1522_v55 }
  0x5d   : > { %v908_v8 = vshll.u32 %v5525_v25, 16  ;;  %v5871_v16 = vcombine.low %v1516_v5, %v1519_v9  ;;  %v1537_v21 = vsel %vm5610_vm7, %v4044_v14, %v1536_v29  ;;  %v1545_v5 = vrot.slane %v1543_v44, 4 }
  0x5e   : > { %v904_v11 = vrot.slane %v6724_v40, 5  ;;  %v4045_v40 = vrot.slane %v5653_v36, 9  ;;  %v6727_v29 = vshll.u32 %v5559_v30, 16 }
  0x60   : > { %4419 = vmatmul.mubr.msk.bf16.vlgmr.msra.gmra.mrb[0].mxu1 %vm369_vm1, %v5426_v13  ;;  %v5816_v13 = vld [vmem:[%s5306_s9 + $0x8c] sm:$0x1] }
  0x61   : > { %4422 = vmatprep.mubr.msk.bf16.mxu1 %vm369_vm1, %v5447_v39  ;;  %4451 = vmatpush3.bf16.msra.mxu1 %v5693_v0  ;;  %v1502_v0 = vsel %vm5610_vm7, %v4039_v48, %v1501_v19  ;;  %v1524_v39 = vrot.slane %v1522_v55, 4  ;;  %v1512_v19 = vsel %vm5610_vm7, %v1510_v4, %v1511_v22  ;;  %v1525_v51 = vrot.slane %v5816_v13, 5  ;;  %v5856_v22 = vld [vmem:[%s5306_s9 + $0xb0] sm:$0x1] }
  0x62   : > { %4949 = vmatprep.subr.msk.bf16.mxu1 %vm418_vm0, %v5800_v54  ;;  %4563 = vmatmul.mubr.msk.bf16.gmra.mrb[8].mxu0 %vm369_vm1, %v5809_v17  ;;  %v4043_v48 = vrot.slane %v5598_v28, 9  ;;  %v1539_v4 = vrot.slane %v5839_v52, 5  ;;  %v901_v17 = vrot.slane %v6723_v23, 4  ;;  %v5866_v37 = vcombine.low %v1509_v61, %v1512_v19 }
  0x63   : > { %4566 = vmatprep.mubr.msk.bf16.mxu0 %vm369_vm1, %v5818_v43  ;;  %v5862_v43 = vcombine.low %v1502_v0, %v1505_v18  ;;  %v1526_v62 = vsel %vm5610_vm7, %v1524_v39, %v1525_v51  ;;  %v1533_v18 = vsel %vm5610_vm7, %v1531_v10, %v1532_v47  ;;  %v1546_v55 = vrot.slane %v5856_v22, 5 }
  0x64   : > { %v1530_v23 = vsel %vm5610_vm7, %v4043_v48, %v1529_v57  ;;  %v1540_v0 = vsel %vm5610_vm7, %v1538_v45, %v1539_v4  ;;  %v905_v61 = vor.u32 %v904_v11, %v901_v17  ;;  %v1550_v39 = vrot.slane %v5703_v38, 5  ;;  %v5904_v17 = vld [vmem:[%s5306_s9 + $0xbc] sm:$0x1] }
  0x65   : > { %v932_v57 = vshll.u32 %v5562_v35, 16  ;;  %v5889_v19 = vrot.slane %v908_v8, 5  ;;  %v6725_v51 = vshrl.u32 %v5525_v25, 16  ;;  %v6726_v47 = vshrl.u32 %v5559_v30, 16 }
  0x66   : > { %v928_v10 = vrot.slane %v6727_v29, 5  ;;  %v5899_v45 = vcombine.low %v1523_v50, %v1526_v62  ;;  %v5901_v11 = vcombine.low %v1530_v23, %v1533_v18  ;;  %v6728_v25 = vshrl.u32 %v5562_v35, 16  ;;  %v5936_v29 = vld [vmem:[%s5306_s9 + $0xc0] sm:$0xf] }
  0x67   : > { %v914_v48 = vrot.slane %v6725_v51, 4  ;;  %v925_v9 = vrot.slane %v6726_v47, 4  ;;  %v5906_v8 = vrot.slane %v932_v57, 5  ;;  %v5912_v4 = vcombine.low %v1537_v21, %v1540_v0 }
  0x68   : > { %4423 = vmatmul.mubr.msk.bf16.gmra.mrb[4].mxu1 %vm369_vm1, %v5491_v32  ;;  %v938_v14 = vrot.slane %v6728_v25, 4  ;;  %v1544_v30 = vsel %vm5610_vm7, %v4045_v40, %v1543_v44  ;;  %v918_v50 = vshll.u32 %v5787_v12, 16  ;;  %v4046_v62 = vrot.slane %v5689_v41, 9 }
  0x69   : > { %4426 = vmatprep.mubr.msk.bf16.mxu1 %vm369_vm1, %v5499_v49  ;;  %v1547_v23 = vsel %vm5610_vm7, %v1545_v5, %v1546_v55  ;;  %v906_v18 = vrot.slane %v905_v61, 4  ;;  %v1552_v57 = vrot.slane %v1550_v39, 4  ;;  %v956_v35 = vshll.u32 %v5578_v59, 16 }
  0x6a   : > { %4567 = vmatmul.mubr.msk.bf16.gmra.mrb[12].mxu0 %vm369_vm1, %v5862_v43  ;;  %v915_v21 = vor.u32 %v914_v48, %v5889_v19  ;;  %v1553_v0 = vrot.slane %v5904_v17, 5  ;;  %v929_v44 = vor.u32 %v928_v10, %v925_v9  ;;  %v942_v12 = vshll.u32 %v5790_v46, 16 }
  0x6b   : > { %4570 = vmatprep.mubr.msk.bf16.mxu0 %vm369_vm1, %v5866_v37  ;;  %v939_v40 = vor.u32 %v938_v14, %v5906_v8  ;;  %v6729_v5 = vshrl.u32 %v5574_v3, 16  ;;  %v6730_v61 = vshll.u32 %v5574_v3, 16  ;;  %v6731_v47 = vshrl.u32 %v5578_v59, 16 }
  0x6c   : > { %v5938_v9 = vrot.slane %v956_v35, 5  ;;  %v6732_v46 = vshrl.u32 %v5598_v28, 16  ;;  %v6733_v25 = vshll.u32 %v5598_v28, 16  ;;  %v920_v3 = vrot.slane %v918_v50, 5 }
  0x6d   : > { %v949_v55 = vrot.slane %v6729_v5, 4  ;;  %v952_v51 = vrot.slane %v6730_v61, 5  ;;  %v962_v48 = vrot.slane %v6731_v47, 4  ;;  %v5945_v5 = vcombine.low %v1544_v30, %v1547_v23 }
  0x6e   : > { %v973_v10 = vrot.slane %v6732_v46, 4  ;;  %v976_v14 = vrot.slane %v6733_v25, 5  ;;  %v1551_v59 = vsel %vm5610_vm7, %v4046_v62, %v1550_v39  ;;  %v6734_v61 = vshrl.u32 %v5601_v42, 16  ;;  %v5955_v46 = vld [vmem:[%s5306_s9 + $0xc4] sm:$0xf] }
  0x6f   : > { %v911_v35 = vsel %vm5399_vm4, %v906_v18, %v5889_v19  ;;  %v930_v28 = vrot.slane %v929_v44, 4  ;;  %v1554_v30 = vsel %vm5610_vm7, %v1552_v57, %v1553_v0  ;;  %v5964_v39 = vld [vmem:[%s5306_s9 + $0xc8] sm:$0x1]  ;;  %v953_v50 = vor.u32 %v952_v51, %v949_v55 }
  0x70   : > { %4427 = vmatmul.mubr.msk.bf16.gmra.mrb[8].mxu1 %vm369_vm1, %v5547_v26  ;;  %v986_v47 = vrot.slane %v6734_v61, 4  ;;  %v916_v26 = vrot.slane %v915_v21, 4  ;;  %v966_v62 = vshll.u32 %v5816_v13, 16  ;;  %v940_v19 = vrot.slane %v939_v40, 4 }
  0x71   : > { %4430 = vmatprep.mubr.msk.bf16.mxu1 %vm369_vm1, %v5570_v2  ;;  %v980_v2 = vshll.u32 %v5601_v42, 16  ;;  %v4116_v42 = vrot.slane %v5936_v29, 9  ;;  %v944_v23 = vrot.slane %v942_v12, 5  ;;  %v977_v18 = vor.u32 %v976_v14, %v973_v10 }
  0x72   : > { %4571 = vmatmul.mubr.msk.bf16.gmra.mrb[16].mxu0 %vm369_vm1, %v5871_v16  ;;  %v2478_v21 = vrot.slane %v5955_v46, 5  ;;  %v990_v57 = vshll.u32 %v5822_v15, 16  ;;  %v1004_v0 = vshll.u32 %v5631_v27, 16  ;;  %v921_v13 = vsel %vm5399_vm4, %v916_v26, %v920_v3 }
  0x73   : > { %v5957_v25 = vrot.slane %v980_v2, 5  ;;  %4574 = vmatprep.mubr.msk.bf16.mxu0 %vm369_vm1, %v5899_v45  ;;  %v963_v2 = vor.u32 %v962_v48, %v5938_v9  ;;  %v5979_v55 = vcombine.low %v1551_v59, %v1554_v30  ;;  %v2481_v12 = vrot.slane %v5964_v39, 5 }
  0x74   : > { %v935_v40 = vsel %vm5399_vm4, %v930_v28, %v5906_v8  ;;  %v954_v15 = vrot.slane %v953_v50, 4  ;;  %v968_v51 = vrot.slane %v966_v62, 5  ;;  %v6735_v48 = vshrl.u32 %v5628_v56, 16 }
  0x75   : > { %v987_v44 = vor.u32 %v986_v47, %v5957_v25  ;;  %v6736_v14 = vshll.u32 %v5628_v56, 16  ;;  %v945_v26 = vsel %vm5399_vm4, %v940_v19, %v944_v23  ;;  %v964_v3 = vrot.slane %v963_v2, 4 }
  0x76   : > { %v997_v10 = vrot.slane %v6735_v48, 4  ;;  %v978_v59 = vrot.slane %v977_v18, 4  ;;  %v1028_v47 = vshll.u32 %v5656_v20, 16  ;;  %v992_v8 = vrot.slane %v990_v57, 5 }
  0x77   : > { %v1000_v61 = vrot.slane %v6736_v14, 5  ;;  %v988_v30 = vrot.slane %v987_v44, 4  ;;  %v5994_v28 = vrot.slane %v1004_v0, 5  ;;  %v6737_v50 = vshrl.u32 %v5631_v27, 16 }
  0x78   : > { %4431 = vmatmul.mubr.msk.bf16.gmra.mrb[12].mxu1 %vm369_vm1, %v5621_v24  ;;  %v2480_v48 = vrot.slane %v2478_v21, 4  ;;  %v6738_v56 = vshrl.u32 %v5653_v36, 16  ;;  %v6739_v24 = vshll.u32 %v5653_v36, 16  ;;  %v6006_v23 = vcombine.low %v935_v40, %v945_v26 }
  0x79   : > { %4434 = vmatprep.mubr.msk.bf16.mxu1 %vm369_vm1, %v5640_v34  ;;  %v1010_v62 = vrot.slane %v6737_v50, 4  ;;  %v5998_v34 = vcombine.low %v911_v35, %v921_v13  ;;  %v959_v2 = vsel %vm5399_vm4, %v954_v15, %v5938_v9  ;;  %v1001_v27 = vor.u32 %v1000_v61, %v997_v10 }
  0x7a   : > { %v1021_v14 = vrot.slane %v6738_v56, 4  ;;  %v1024_v19 = vrot.slane %v6739_v24, 5  ;;  %4575 = vmatmul.mubr.msk.bf16.gmra.mrb[20].mxu0 %vm369_vm1, %v5901_v11  ;;  %v1014_v35 = vshll.u32 %v5839_v52, 16  ;;  %v969_v18 = vsel %vm5399_vm4, %v964_v3, %v968_v51 }
  0x7b   : > { %4578 = vmatprep.mubr.msk.bf16.mxu0 %vm369_vm1, %v5912_v4  ;;  %v1030_v36 = vrot.slane %v1028_v47, 5  ;;  %v6740_v24 = vshrl.u32 %v5656_v20, 16  ;;  %v6741_v57 = vrot.slane %v5312_v7, 5  ;;  %v6742_v0 = vrot.slane %v5309_v6, 9 }
  0x7c   : > { %v983_v52 = vsel %vm5399_vm4, %v978_v59, %v5957_v25  ;;  %v993_v13 = vsel %vm5399_vm4, %v988_v30, %v992_v8  ;;  %v1011_v40 = vor.u32 %v1010_v62, %v5994_v28  ;;  %v1038_v20 = vshll.u32 %v5856_v22, 16 }
  0x7d   : > { %v1034_v44 = vrot.slane %v6740_v24, 4  ;;  %v6024_v9 = vsel %vm5610_vm7, %v6742_v0, %v6741_v57  ;;  %v2479_v6 = vsel %vm5610_vm7, %v4116_v42, %v2478_v21  ;;  %v2482_v7 = vsel %vm5610_vm7, %v2480_v48, %v2481_v12 }
  0x7e   : > { %v1025_v15 = vor.u32 %v1024_v19, %v1021_v14  ;;  %v1448_v51 = vrot.slane %v5706_v58, 5  ;;  %v6042_v25 = vcombine.low %v959_v2, %v969_v18  ;;  %v1002_v10 = vrot.slane %v1001_v27, 4 }
  0x7f   : > { %v1016_v61 = vrot.slane %v1014_v35, 5  ;;  %v1052_v22 = vshll.u32 %v5703_v38, 16  ;;  %v6045_v26 = vcombine.low %v983_v52, %v993_v13  ;;  %v1035_v3 = vor.u32 %v1034_v44, %v1030_v36 }
  0x80   : > { %4435 = vmatmul.mubr.msk.bf16.gmra.mrb[16].mxu1 %vm369_vm1, %v5998_v34  ;;  %v6743_v42 = vshrl.u32 %v5689_v41, 16  ;;  %v1449_v12 = vsel %vm5610_vm7, %v5682_v1, %v1448_v51  ;;  %v1012_v58 = vrot.slane %v1011_v40, 4  ;;  %v1040_v59 = vrot.slane %v1038_v20, 5 }
  0x81   : > { %4438 = vmatprep.mubr.msk.bf16.mxu1 %vm369_vm1, %v6006_v23  ;;  %v6744_v47 = vshll.u32 %v5689_v41, 16  ;;  %v4048_v8 = vcombine.low %v6024_v9, %v1449_v12  ;;  %v1026_v50 = vrot.slane %v1025_v15, 4  ;;  %v2184_v62 = vshrl.u32 %v5936_v29, 16 }
  0x82   : > { %v1045_v21 = vrot.slane %v6743_v42, 4  ;;  %v2187_v48 = vshll.u32 %v5936_v29, 16  ;;  %v2193_v56 = vshll.u32 %v5955_v46, 16  ;;  %4579 = vmatmul.mubr.msk.bf16.gmra.mrb[24].mxu0 %vm369_vm1, %v5945_v5  ;;  %v1054_v14 = vrot.slane %v1052_v22, 5  ;;  %v6746_v42 = vld [vmem:[#allocation8_spill] sm:$0xff] }
  0x83   : > { %v1048_v30 = vrot.slane %v6744_v47, 5  ;;  %v6745_v1 = vshrl.u32 %v5703_v38, 16  ;;  %v2197_v2 = vshrl.u32 %v5955_v46, 16  ;;  %v2203_v41 = vshll.u32 %v5964_v39, 16  ;;  %4582 = vmatprep.mubr.msk.bf16.mxu0 %vm369_vm1, %v5979_v55 }
  0x84   : > { %v1036_v27 = vrot.slane %v1035_v3, 4  ;;  %v2186_v35 = vrot.slane %v2184_v62, 4  ;;  %v2189_v18 = vrot.slane %v2187_v48, 5  ;;  %v2195_v24 = vrot.slane %v2193_v56, 5  ;;  %v6748_v62 = vld [vmem:[#allocation10_spill] sm:$0xff]  ;;  %v6750_v48 = vld [vmem:[#allocation13_spill] sm:$0xff] }
  0x85   : > { %v1058_v19 = vrot.slane %v6745_v1, 4  ;;  %v6066_v44 = vcombine.low %v2479_v6, %v2482_v7  ;;  %v2199_v57 = vrot.slane %v2197_v2, 4  ;;  %v1007_v38 = vsel %vm5399_vm4, %v1002_v10, %v5994_v28  ;;  %v6752_v1 = vld [vmem:[#allocation15_spill] sm:$0xff] }
  0x86   : > { %v1017_v39 = vsel %vm5399_vm4, %v1012_v58, %v1016_v61  ;;  %v1062_v0 = vshll.u32 %v5904_v17, 16  ;;  %v2190_v9 = vor.u32 %v2189_v18, %v2186_v35  ;;  %v1049_v52 = vor.u32 %v1048_v30, %v1045_v21  ;;  %v4172_v30 = vld [vmem:[%s6640_s1 + $0x10] sm:$0x3]  ;;  %v6756_v2 = vld [vmem:[#allocation19_spill] sm:$0xff]  ;;  %v6759_v35 = vld [vmem:[#allocation20_spill] sm:$0xff] }
  0x87   : > { %v1059_v13 = vor.u32 %v1058_v19, %v1054_v14  ;;  %v2200_v40 = vor.u32 %v2199_v57, %v2195_v24  ;;  %v2205_v20 = vrot.slane %v2203_v41, 5  ;;  %v1031_v6 = vsel %vm5399_vm4, %v1026_v50, %v1030_v36  ;;  %v6747_v50 = vld [vmem:[#allocation9_spill] sm:$0xff]  ;;  %v6755_v19 = vld [vmem:[#allocation16_spill] sm:$0xff]  ;;  %v6760_v18 = vld [vmem:[#allocation22_spill] sm:$0xff] }
  0x88   : > { %4439 = vmatmul.mubr.msk.bf16.gmra.mrb[20].mxu1 %vm369_vm1, %v6042_v25  ;;  %v1041_v7 = vsel %vm5399_vm4, %v1036_v27, %v1040_v59  ;;  %v2191_v28 = vrot.slane %v2190_v9, 4  ;;  %v6082_v51 = vcombine.low %v1007_v38, %v1017_v39  ;;  %v1064_v10 = vrot.slane %v1062_v0, 5  ;;  %v6757_v41 = vld [vmem:[#allocation29_spill] sm:$0xff]  ;;  %v6758_v27 = vld [vmem:[#allocation30_spill] sm:$0xff]  ;;  %v6762_v57 = vld [vmem:[#allocation24_spill] sm:$0xff] }
  0x89   : > { %4442 = vmatprep.mubr.msk.bf16.mxu1 %vm369_vm1, %v6045_v26  ;;  %v2201_v15 = vrot.slane %v2200_v40, 4  ;;  %v6088_v61 = vcombine.low %v1031_v6, %v1041_v7  ;;  %v1050_v22 = vrot.slane %v1049_v52, 4  ;;  %v1060_v3 = vrot.slane %v1059_v13, 4  ;;  %v6763_v38 = vld [vmem:[#allocation25_spill] sm:$0xff]  ;;  %v6764_v0 = vld [vmem:[#allocation27_spill] sm:$0xff]  ;;  %v6768_v6 = vld [vmem:[#allocation18_spill] sm:$0xff] }
  0x8a   : > { %v2196_v17 = vsel %vm5399_vm4, %v2191_v28, %v2195_v24  ;;  %4583 = vmatmul.mubr.msk.bf16.gmra.mrb[28].mxu0 %vm369_vm1, %v6066_v44  ;;  %v3054_v59 = vsel %vm418_vm0, %v5725_v33, 0  ;;  %v6749_v33 = vld [vmem:[#allocation11_spill] sm:$0xff]  ;;  %v1924_v56 = vsel %vm418_vm0, %v5800_v54, 0  ;;  %v6753_v54 = vld [vmem:[#allocation26_spill] sm:$0xff]  ;;  %v6167_v39 = vcombine.low %v5936_v29, %v5955_v46  ;;  %v6174_v9 = vld [vmem:[%s5306_s9 + $0xcc] sm:$0xf] }
  0x8b   : > { %v2206_v36 = vsel %vm5399_vm4, %v2201_v15, %v2205_v20  ;;  %4588 = vmatprep.mubr.msk.bf16.mxu0 %vm369_vm1, %v6746_v42  ;;  %v1055_v12 = vsel %vm5399_vm4, %v1050_v22, %v1054_v14  ;;  %v1065_v58 = vsel %vm5399_vm4, %v1060_v3, %v1064_v10  ;;  %v6751_v14 = vld [vmem:[#allocation14_spill] sm:$0xff]  ;;  %v6761_v24 = vld [vmem:[#allocation31_spill] sm:$0xff]  ;;  %v6765_v29 = vld [vmem:[#allocation12_spill] sm:$0xff]  ;;  %v3330_v46 = vsel %vm418_vm0, %v4172_v30, 0 }
  0x8c   : > { %v6094_v21 = vcombine.low %v2196_v17, %v2206_v36  ;;  %v6106_v47 = vcombine.low %v1055_v12, %v1065_v58  ;;  %v6177_v52 = vld [vmem:[%s5306_s9 + $0xd0] sm:$0xf]  ;;  %v6766_v40 = vld [vmem:[#allocation7_spill] sm:$0xff]  ;;  %v6767_v20 = vld [vmem:[#allocation17_spill] sm:$0xff]  ;;  %v3022_v28 = vshrl.u32 %v6174_v9, 16  ;;  %v3025_v15 = vshll.u32 %v6174_v9, 16 }
  0x8d   : > { %v4136_v13 = vcombine.low %v6174_v9, %v6177_v52  ;;  %v6771_v7 = vld [vmem:[#allocation23_spill] sm:$0xff]  ;;  %v3035_v10 = vshrl.u32 %v6177_v52, 16  ;;  %v3031_v17 = vshll.u32 %v6177_v52, 16  ;;  %v223_v12 = vld [vmem:[%s5306_s9 + $0xd4] sm:$0x1]  ;;  %v3316_v53 = vrot.slane %v6177_v52, 5 }
  0x8e   : > { %v3024_v22 = vrot.slane %v3022_v28, 4  ;;  %v3027_v3 = vrot.slane %v3025_v15, 5  ;;  %s4228_s9 = sshll.u32 %s5253_s16, 12  ;;  %s6598_s16 = scalar_lea.sflag [#allocation4], %s161_s6 }
  0x8f   : > { %v3033_v36 = vrot.slane %v3031_v17, 5  ;;  %s6588_s19 = scalar_lea.hbm %s6642_s3, %s4228_s9 }
  0x90   : > { %4443 = vmatmul.mubr.msk.bf16.gmra.mrb[24].mxu1 %vm369_vm1, %v6082_v51  ;;  %v3028_v58 = vor.u32 %v3027_v3, %v3024_v22 }
  0x91   : > { %4446 = vmatprep.mubr.msk.bf16.mxu1 %vm369_vm1, %v6088_v61 }
  0x92   : > { %4589 = vmatmul.mubr.msk.bf16.vlgmr.msra.gmra.mrb[0].mxu0 %vm369_vm1, %v6747_v50 }
  0x93   : > { %4621 = vmatpush3.bf16.msra.mxu0 %v3054_v59  ;;  %4592 = vmatprep.mubr.msk.bf16.mxu0 %vm369_vm1, %v6748_v62 }
  0x94   : > { %4955 = vmatprep.subr.msk.bf16.mxu0 %vm418_vm0, %v4172_v30  ;;  %v3041_v30 = vshll.u32 %v223_v12, 16 }
  0x98   : > { %4447 = vmatmul.mubr.msk.bf16.gmra.mrb[28].mxu1 %vm369_vm1, %v6106_v47 }
  0x99   : > { %4452 = vmatprep.mubr.msk.bf16.mxu1 %vm369_vm1, %v4048_v8  ;;  %v5144_v8 = vld [vmem:[%s6640_s1 + $0x8] sm:$0x3] }
  0x9a   : > { %4593 = vmatmul.mubr.msk.bf16.gmra.mrb[4].mxu0 %vm369_vm1, %v6749_v33 }
  0x9b   : > { %4596 = vmatprep.mubr.msk.bf16.mxu0 %vm369_vm1, %v6750_v48 }
  0xa0   : > { %4453 = vmatmul.mubr.msk.bf16.vlgmr.msra.gmra.mrb[0].mxu1 %vm369_vm1, %v5661_v63  ;;  %v6754_v63 = vld [vmem:[#allocation28_spill] sm:$0xff] }
  0xa1   : > { %4456 = vmatprep.mubr.msk.bf16.mxu1 %vm369_vm1, %v5695_v31  ;;  %4485 = vmatpush3.bf16.msra.mxu1 %v1924_v56 }
  0xa2   : > { %4951 = vmatprep.subr.msk.bf16.mxu1 %vm418_vm0, %v5144_v8  ;;  %4597 = vmatmul.mubr.msk.bf16.gmra.mrb[8].mxu0 %vm369_vm1, %v6751_v14 }
  0xa3   : > { %4600 = vmatprep.mubr.msk.bf16.mxu0 %vm369_vm1, %v6752_v1 }
  0xa8   : > { %4457 = vmatmul.mubr.msk.bf16.gmra.mrb[4].mxu1 %vm369_vm1, %v6753_v54 }
  0xa9   : > { %4460 = vmatprep.mubr.msk.bf16.mxu1 %vm369_vm1, %v6754_v63 }
  0xaa   : > { %4601 = vmatmul.mubr.msk.bf16.gmra.mrb[12].mxu0 %vm369_vm1, %v6755_v19 }
  0xab   : > { %4604 = vmatprep.mubr.msk.bf16.mxu0 %vm369_vm1, %v6756_v2 }
  0xb0   : > { %4461 = vmatmul.mubr.msk.bf16.gmra.mrb[8].mxu1 %vm369_vm1, %v6757_v41 }
  0xb1   : > { %4464 = vmatprep.mubr.msk.bf16.mxu1 %vm369_vm1, %v6758_v27 }
  0xb2   : > { %4605 = vmatmul.mubr.msk.bf16.gmra.mrb[16].mxu0 %vm369_vm1, %v6759_v35 }
  0xb3   : > { %4608 = vmatprep.mubr.msk.bf16.mxu0 %vm369_vm1, %v6760_v18 }
  0xb8   : > { %4465 = vmatmul.mubr.msk.bf16.gmra.mrb[12].mxu1 %vm369_vm1, %v6761_v24 }
  0xb9   : > { %4468 = vmatprep.mubr.msk.bf16.mxu1 %vm369_vm1, %v5862_v43 }
  0xba   : > { %4609 = vmatmul.mubr.msk.bf16.gmra.mrb[20].mxu0 %vm369_vm1, %v6762_v57 }
  0xbb   : > { %4612 = vmatprep.mubr.msk.bf16.mxu0 %vm369_vm1, %v6763_v38 }
  0xc0   : > { %4469 = vmatmul.mubr.msk.bf16.gmra.mrb[16].mxu1 %vm369_vm1, %v5866_v37 }
  0xc1   : > { %4472 = vmatprep.mubr.msk.bf16.mxu1 %vm369_vm1, %v5871_v16 }
  0xc2   : > { %4613 = vmatmul.mubr.msk.bf16.gmra.mrb[24].mxu0 %vm369_vm1, %v6764_v0 }
  0xc3   : > { %4616 = vmatprep.mubr.msk.bf16.mxu0 %vm369_vm1, %v6167_v39 }
  0xc8   : > { %4473 = vmatmul.mubr.msk.bf16.gmra.mrb[20].mxu1 %vm369_vm1, %v5899_v45 }
  0xc9   : > { %4476 = vmatprep.mubr.msk.bf16.mxu1 %vm369_vm1, %v5901_v11 }
  0xca   : > { %4617 = vmatmul.mubr.msk.bf16.gmra.mrb[28].mxu0 %vm369_vm1, %v4136_v13 }
  0xcb   : > { %4622 = vmatprep.mubr.msk.bf16.mxu0 %vm369_vm1, %v6765_v29 }
  0xd0   : > { %4477 = vmatmul.mubr.msk.bf16.gmra.mrb[24].mxu1 %vm369_vm1, %v5912_v4 }
  0xd1   : > { %4480 = vmatprep.mubr.msk.bf16.mxu1 %vm369_vm1, %v5945_v5 }
  0xd2   : > { %4623 = vmatmul.mubr.msk.bf16.vlgmr.msra.gmra.mrb[0].mxu0 %vm369_vm1, %v5491_v32  ;;  %v6769_v32 = vld [vmem:[#allocation6_spill] sm:$0xff] }
  0xd3   : > { %4655 = vmatpush3.bf16.msra.mxu0 %v3330_v46  ;;  %4626 = vmatprep.mubr.msk.bf16.mxu0 %vm369_vm1, %v5499_v49  ;;  %v6770_v49 = vld [vmem:[#allocation21_spill] sm:$0xff] }
  0xd8   : > { %4481 = vmatmul.mubr.msk.bf16.gmra.mrb[28].mxu1 %vm369_vm1, %v5979_v55 }
  0xd9   : > { %4486 = vmatprep.mubr.msk.bf16.mxu1 %vm369_vm1, %v6766_v40 }
  0xda   : > { %4627 = vmatmul.mubr.msk.bf16.gmra.mrb[4].mxu0 %vm369_vm1, %v6767_v20 }
  0xdb   : > { %4630 = vmatprep.mubr.msk.bf16.mxu0 %vm369_vm1, %v6768_v6 }
  0xe0   : > { %4487 = vmatmul.mubr.msk.bf16.vlgmr.msra.gmra.mrb[0].mxu1 %vm369_vm1, %v6746_v42  ;;  %v3037_v42 = vrot.slane %v3035_v10, 4 }
  0xe1   : > { %4490 = vmatprep.mubr.msk.bf16.mxu1 %vm369_vm1, %v6747_v50  ;;  %4689 = vmatpush3.bf16.msra.mxu1 %v6769_v32  ;;  %v3029_v50 = vrot.slane %v3028_v58, 4 }
  0xe2   : > { %4631 = vmatmul.mubr.msk.bf16.gmra.mrb[8].mxu0 %vm369_vm1, %v6770_v49  ;;  %v3038_v59 = vor.u32 %v3037_v42, %v3033_v36 }
  0xe3   : > { %4634 = vmatprep.mubr.msk.bf16.mxu0 %vm369_vm1, %v6771_v7 }
  0xe8   : > { %4491 = vmatmul.mubr.msk.bf16.gmra.mrb[4].mxu1 %vm369_vm1, %v6748_v62  ;;  %v3039_v62 = vrot.slane %v3038_v59, 4 }
  0xe9   : > { %4494 = vmatprep.mubr.msk.bf16.mxu1 %vm369_vm1, %v6749_v33  ;;  %v3043_v33 = vrot.slane %v3041_v30, 5 }
  0xea   : > { %4635 = vmatmul.mubr.msk.bf16.gmra.mrb[12].mxu0 %vm369_vm1, %v5998_v34 }
  0xeb   : > { %4638 = vmatprep.mubr.msk.bf16.mxu0 %vm369_vm1, %v6006_v23  ;;  %v3044_v56 = vsel %vm5399_vm4, %v3039_v62, %v3043_v33 }
  0xf0   : > { %4495 = vmatmul.mubr.msk.bf16.gmra.mrb[8].mxu1 %vm369_vm1, %v6750_v48  ;;  %v3034_v48 = vsel %vm5399_vm4, %v3029_v50, %v3033_v36 }
  0xf1   : > { %4498 = vmatprep.mubr.msk.bf16.mxu1 %vm369_vm1, %v6751_v14  ;;  %v4154_v8 = vcombine.low %v3034_v48, %v3044_v56 }
  0xf2   : > { %4639 = vmatmul.mubr.msk.bf16.gmra.mrb[16].mxu0 %vm369_vm1, %v6042_v25 }
  0xf3   : > { %4642 = vmatprep.mubr.msk.bf16.mxu0 %vm369_vm1, %v6045_v26 }
  0xf8   : > { %4499 = vmatmul.mubr.msk.bf16.gmra.mrb[12].mxu1 %vm369_vm1, %v6752_v1 }
  0xf9   : > { %4502 = vmatprep.mubr.msk.bf16.mxu1 %vm369_vm1, %v6755_v19  ;;  %v6332_v19 = vld [vmem:[%s6641_s2] ss:$0 sm:$0xff] }
  0xfa   : > { %4643 = vmatmul.mubr.msk.bf16.gmra.mrb[20].mxu0 %vm369_vm1, %v6082_v51 }
  0xfb   : > { %4646 = vmatprep.mubr.msk.bf16.mxu0 %vm369_vm1, %v6088_v61 }
 0x100   : > { %4503 = vmatmul.mubr.msk.bf16.gmra.mrb[16].mxu1 %vm369_vm1, %v6756_v2 }
 0x101   : > { %4506 = vmatprep.mubr.msk.bf16.mxu1 %vm369_vm1, %v6759_v35 }
 0x102   : > { %4647 = vmatmul.mubr.msk.bf16.gmra.mrb[24].mxu0 %vm369_vm1, %v6106_v47 }
 0x103   : > { %4650 = vmatprep.mubr.msk.bf16.mxu0 %vm369_vm1, %v6094_v21 }
 0x108   : > { %4507 = vmatmul.mubr.msk.bf16.gmra.mrb[20].mxu1 %vm369_vm1, %v6760_v18 }
 0x109   : > { %4510 = vmatprep.mubr.msk.bf16.mxu1 %vm369_vm1, %v6762_v57 }
 0x10a   : > { %4651 = vmatmul.mubr.msk.bf16.gmra.mrb[28].mxu0 %vm369_vm1, %v4154_v8 }
 0x10b   : > { %4656 = vmatprep.mubr.msk.bf16.mxu0 %vm369_vm1, %v5695_v31  ;;  %v3319_v31 = vrot.slane %v223_v12, 5 }
 0x110   : > { %4511 = vmatmul.mubr.msk.bf16.gmra.mrb[24].mxu1 %vm369_vm1, %v6763_v38 }
 0x111   : > { %4514 = vmatprep.mubr.msk.bf16.mxu1 %vm369_vm1, %v6764_v0 }
 0x112   : > { %4657 = vmatmul.mubr.msk.bf16.vlgmr.msra.gmra.mrb[0].mxu0 %vm369_vm1, %v6753_v54 }
 0x113   : > { %4660 = vmatprep.mubr.msk.bf16.mxu0 %vm369_vm1, %v6754_v63 }
 0x118   : > { %4515 = vmatmul.mubr.msk.bf16.gmra.mrb[28].mxu1 %vm369_vm1, %v6167_v39 }
 0x119   : > { %4536 = vmatprep.mubr.msk.bf16.mxu1 %vm369_vm1, %v5998_v34  ;;  %v4171_v34 = vrot.slane %v6174_v9, 9 }
 0x11a   : > { %4661 = vmatmul.mubr.msk.bf16.gmra.mrb[4].mxu0 %vm369_vm1, %v6757_v41 }
 0x11b   : > { %4664 = vmatprep.mubr.msk.bf16.mxu0 %vm369_vm1, %v6758_v27 }
 0x120   : > { %4537 = vmatmul.mubr.msk.bf16.vlgmr.msra.gmra.mrb[16].mxu1 %vm369_vm1, %v6006_v23 }
 0x121   : > { %4540 = vmatprep.mubr.msk.bf16.mxu1 %vm369_vm1, %v6042_v25 }
 0x122   : > { %4665 = vmatmul.mubr.msk.bf16.gmra.mrb[8].mxu0 %vm369_vm1, %v6761_v24 }
 0x123   : > { %4668 = vmatprep.mubr.msk.bf16.mxu0 %vm369_vm1, %v5862_v43  ;;  %v3317_v43 = vsel %vm5610_vm7, %v4171_v34, %v3316_v53 }
 0x128   : > { %4541 = vmatmul.mubr.msk.bf16.gmra.mrb[20].mxu1 %vm369_vm1, %v6045_v26 }
 0x129   : > { %4544 = vmatprep.mubr.msk.bf16.mxu1 %vm369_vm1, %v6082_v51 }
 0x12a   : > { %4669 = vmatmul.mubr.msk.bf16.gmra.mrb[12].mxu0 %vm369_vm1, %v5866_v37 }
 0x12b   : > { %4672 = vmatprep.mubr.msk.bf16.mxu0 %vm369_vm1, %v5871_v16  ;;  %v3318_v16 = vrot.slane %v3316_v53, 4 }
 0x12d   : > { %v3320_v37 = vsel %vm5610_vm7, %v3318_v16, %v3319_v31 }
 0x130   : > { %4545 = vmatmul.mubr.msk.bf16.gmra.mrb[24].mxu1 %vm369_vm1, %v6088_v61 }
 0x131   : > { %4548 = vmatprep.mubr.msk.bf16.mxu1 %vm369_vm1, %v6106_v47 }
 0x132   : > { %4673 = vmatmul.mubr.msk.bf16.gmra.mrb[16].mxu0 %vm369_vm1, %v5899_v45  ;;  %v4173_v45 = vcombine.low %v3317_v43, %v3320_v37 }
 0x133   : > { %4676 = vmatprep.mubr.msk.bf16.mxu0 %vm369_vm1, %v5901_v11 }
 0x138   : > { %4549 = vmatmul.mubr.msk.bf16.gmra.mrb[28].mxu1 %vm369_vm1, %v6094_v21 }
 0x13a   : > { %4677 = vmatmul.mubr.msk.bf16.gmra.mrb[20].mxu0 %vm369_vm1, %v5912_v4 }
 0x13b   : > { %4680 = vmatprep.mubr.msk.bf16.mxu0 %vm369_vm1, %v5945_v5 }
 0x142   : > { %4681 = vmatmul.mubr.msk.bf16.gmra.mrb[24].mxu0 %vm369_vm1, %v5979_v55 }
 0x143   : > { %4684 = vmatprep.mubr.msk.bf16.mxu0 %vm369_vm1, %v6066_v44 }
 0x14a   : > { %4685 = vmatmul.mubr.msk.bf16.gmra.mrb[28].mxu0 %vm369_vm1, %v4173_v45 }
 0x1b3   : > { %v4488_v11 = vpop.f32.mrb[0].mxu1 }
 0x1b4   : > { %v1960_v4 = vpop.f32.mrb[1].mxu1 }
 0x1b5   : > { %v4489_v5 = vpop.f32.mrb[2].mxu1 }
 0x1b6   : > { %v1963_v23 = vpop.f32.mrb[3].mxu1 }
 0x1bb   : > { %v4492_v25 = vpop.f32.mrb[4].mxu1 }
 0x1bc   : > { %v1976_v26 = vpop.f32.mrb[5].mxu1 }
 0x1bd   : > { %v4493_v51 = vpop.f32.mrb[6].mxu1 }
 0x1be   : > { %v1979_v55 = vpop.f32.mrb[7].mxu1 }
 0x1c3   : > { %v4496_v61 = vpop.f32.mrb[8].mxu1 }
 0x1c4   : > { %v1992_v21 = vpop.f32.mrb[9].mxu1 }
 0x1c5   : > { %v4497_v44 = vpop.f32.mrb[10].mxu1 }
 0x1c6   : > { %v6319_v47 = vpop.f32.mrb[11].mxu1 }
 0x1cb   : > { %v6321_v14 = vpop.f32.mrb[12].mxu1 }
 0x1cc   : > { %v6323_v60 = vpop.f32.mrb[13].mxu1 }
 0x1cd   : > { %v6325_v1 = vpop.f32.mrb[14].mxu1 }
 0x1ce   : > { %v6327_v54 = vpop.f32.mrb[15].mxu1 }
 0x1e5   : > { %v4658_v63 = vpop.f32.mrb[0].mxu0 }
 0x1e6   : > { %v4690_v2 = vadd.f32 %v4658_v63, %v4488_v11  ;;  %v3366_v41 = vpop.f32.mrb[1].mxu0 }
 0x1e7   : > { %v4691_v27 = vadd.f32 %v3366_v41, %v1960_v4  ;;  %v4659_v35 = vpop.f32.mrb[2].mxu0 }
 0x1e8   : > { %v6335_v18 = vadd.f32 %v4690_v2, %v6332_v19  ;;  %v4692_v24 = vadd.f32 %v4659_v35, %v4489_v5  ;;  %v3369_v57 = vpop.f32.mrb[3].mxu0 }
 0x1e9   : > { %v6338_v38 = vadd.f32 %v4691_v27, %v6332_v19  ;;  %v4693_v39 = vadd.f32 %v3369_v57, %v1963_v23 }
 0x1ea   : > { %v4193_v0 = vmul.f32 -1.442695, %v6335_v18  ;;  %v6342_v9 = vadd.f32 %v4692_v24, %v6332_v19 }
 0x1eb   : > { %v4191_v52 = vmul.f32 -1.442695, %v6338_v38  ;;  %v6346_v13 = vadd.f32 %v4693_v39, %v6332_v19 }
 0x1ec   : > { %5016 = vpow2.f32 %v4193_v0  ;;  %v4194_v29 = vmul.f32 -1.442695, %v6342_v9 }
 0x1ed   : > { %5018 = vpow2.f32 %v4191_v52  ;;  %v4192_v46 = vmul.f32 -1.442695, %v6346_v13  ;;  %v4662_v40 = vpop.f32.mrb[4].mxu0 }
 0x1ee   : > { %5020 = vpow2.f32 %v4194_v29  ;;  %v4694_v20 = vadd.f32 %v4662_v40, %v4492_v25  ;;  %v3382_v6 = vpop.f32.mrb[5].mxu0 }
 0x1ef   : > { %5022 = vpow2.f32 %v4192_v46  ;;  %v4695_v32 = vadd.f32 %v3382_v6, %v1976_v26  ;;  %v4663_v49 = vpop.f32.mrb[6].mxu0 }
 0x1f0   : > { %v6351_v7 = vadd.f32 %v4694_v20, %v6332_v19  ;;  %v4696_v28 = vadd.f32 %v4663_v49, %v4493_v51  ;;  %v3385_v15 = vpop.f32.mrb[7].mxu0 }
 0x1f1   : > { %v6356_v17 = vadd.f32 %v4695_v32, %v6332_v19  ;;  %v4697_v22 = vadd.f32 %v3385_v15, %v1979_v55 }
 0x1f2   : > { %v4197_v36 = vmul.f32 -1.442695, %v6351_v7  ;;  %v6362_v42 = vadd.f32 %v4696_v28, %v6332_v19 }
 0x1f3   : > { %v6353_v10 = vpop.f32.mrb[16].mxu1  ;;  %v4195_v58 = vmul.f32 -1.442695, %v6356_v17  ;;  %v6368_v59 = vadd.f32 %v4697_v22, %v6332_v19 }
 0x1f4   : > { %v6358_v3 = vpop.f32.mrb[17].mxu1  ;;  %5024 = vpow2.f32 %v4197_v36  ;;  %v4198_v50 = vmul.f32 -1.442695, %v6362_v42 }
 0x1f5   : > { %v6364_v12 = vpop.f32.mrb[18].mxu1  ;;  %5026 = vpow2.f32 %v4195_v58  ;;  %v4196_v62 = vmul.f32 -1.442695, %v6368_v59  ;;  %v4666_v33 = vpop.f32.mrb[8].mxu0 }
 0x1f6   : > { %v6370_v30 = vpop.f32.mrb[19].mxu1  ;;  %v5017_v48 = vpop.eup %5016  ;;  %5028 = vpow2.f32 %v4198_v50  ;;  %v4698_v56 = vadd.f32 %v4666_v33, %v4496_v61 }
 0x1f7   : > { %v3398_v8 = vpop.f32.mrb[9].mxu0  ;;  %v5019_v53 = vpop.eup %5018  ;;  %v3726_v34 = vadd.f32 1.0, %v5017_v48  ;;  %5030 = vpow2.f32 %v4196_v62 }
 0x1f8   : > { %v4699_v16 = vadd.f32 %v3398_v8, %v1992_v21  ;;  %v4667_v31 = vpop.f32.mrb[10].mxu0  ;;  %v5021_v43 = vpop.eup %5020  ;;  %v3724_v37 = vadd.f32 1.0, %v5019_v53  ;;  %v6375_v45 = vadd.f32 %v4698_v56, %v6332_v19 }
 0x1f9   : > { %v4700_v11 = vadd.f32 %v4667_v31, %v4497_v44  ;;  %v3401_v4 = vpop.f32.mrb[11].mxu0  ;;  %v5023_v23 = vpop.eup %5022  ;;  %5032 = vrcp.f32 %v3726_v34  ;;  %v3727_v25 = vadd.f32 1.0, %v5021_v43 }
 0x1fa   : > { %v6380_v26 = vadd.f32 %v4699_v16, %v6332_v19  ;;  %v4701_v51 = vadd.f32 %v3401_v4, %v6319_v47  ;;  %5034 = vrcp.f32 %v3724_v37  ;;  %v3725_v61 = vadd.f32 1.0, %v5023_v23 }
 0x1fb   : > { %v6377_v5 = vpop.f32.mrb[20].mxu1  ;;  %v4201_v21 = vmul.f32 -1.442695, %v6375_v45  ;;  %v6387_v44 = vadd.f32 %v4700_v11, %v6332_v19  ;;  %5036 = vrcp.f32 %v3727_v25 }
 0x1fc   : > { %v6383_v55 = vpop.f32.mrb[21].mxu1  ;;  %v4199_v2 = vmul.f32 -1.442695, %v6380_v26  ;;  %v6393_v41 = vadd.f32 %v4701_v51, %v6332_v19  ;;  %5038 = vrcp.f32 %v3725_v61 }
 0x1fd   : > { %v6389_v63 = vpop.f32.mrb[22].mxu1  ;;  %v4202_v47 = vmul.f32 -1.442695, %v6387_v44  ;;  %5040 = vpow2.f32 %v4201_v21  ;;  %v4670_v24 = vpop.f32.mrb[12].mxu0 }
 0x1fe   : > { %v6395_v27 = vpop.f32.mrb[23].mxu1  ;;  %v4200_v35 = vmul.f32 -1.442695, %v6393_v41  ;;  %v5025_v57 = vpop.eup %5024  ;;  %5042 = vpow2.f32 %v4199_v2  ;;  %v4702_v39 = vadd.f32 %v4670_v24, %v6321_v14 }
 0x1ff   : > { %v3414_v0 = vpop.f32.mrb[13].mxu0  ;;  %v5027_v52 = vpop.eup %5026  ;;  %v3730_v29 = vadd.f32 1.0, %v5025_v57  ;;  %5044 = vpow2.f32 %v4202_v47 }
 0x200   : > { %v4703_v46 = vadd.f32 %v3414_v0, %v6323_v60  ;;  %v4671_v40 = vpop.f32.mrb[14].mxu0  ;;  %v5029_v20 = vpop.eup %5028  ;;  %v3728_v6 = vadd.f32 1.0, %v5027_v52  ;;  %5046 = vpow2.f32 %v4200_v35  ;;  %v6407_v32 = vadd.f32 %v4702_v39, %v6332_v19 }
 0x201   : > { %v4704_v49 = vadd.f32 %v4671_v40, %v6325_v1  ;;  %v3417_v28 = vpop.f32.mrb[15].mxu0  ;;  %v5031_v15 = vpop.eup %5030  ;;  %5048 = vrcp.f32 %v3730_v29  ;;  %v3731_v22 = vadd.f32 1.0, %v5029_v20 }
 0x202   : > { %v6413_v60 = vadd.f32 %v4703_v46, %v6332_v19  ;;  %v4705_v36 = vadd.f32 %v3417_v28, %v6327_v54  ;;  %5050 = vrcp.f32 %v3728_v6  ;;  %v3729_v50 = vadd.f32 1.0, %v5031_v15 }
 0x203   : > { %v6410_v14 = vpop.f32.mrb[24].mxu1  ;;  %v4205_v62 = vmul.f32 -1.442695, %v6407_v32  ;;  %v6420_v33 = vadd.f32 %v4704_v49, %v6332_v19  ;;  %v5033_v48 = vpop.eup %5032  ;;  %5052 = vrcp.f32 %v3731_v22 }
 0x204   : > { %v6416_v58 = vpop.f32.mrb[25].mxu1  ;;  %v4203_v56 = vmul.f32 -1.442695, %v6413_v60  ;;  %v6426_v8 = vadd.f32 %v4705_v36, %v6332_v19  ;;  %v5035_v53 = vpop.eup %5034  ;;  %v3822_v34 = vmul.f32 %v5033_v48, %v6335_v18  ;;  %5054 = vrcp.f32 %v3729_v50 }
 0x205   : > { %v6422_v1 = vpop.f32.mrb[26].mxu1  ;;  %v4206_v16 = vmul.f32 -1.442695, %v6420_v33  ;;  %v5037_v31 = vpop.eup %5036  ;;  %v3820_v43 = vmul.f32 %v5035_v53, %v6338_v38  ;;  %5056 = vpow2.f32 %v4205_v62 }
 0x206   : > { %v6428_v54 = vpop.f32.mrb[27].mxu1  ;;  %v4204_v37 = vmul.f32 -1.442695, %v6426_v8  ;;  %v4674_v11 = vpop.f32.mrb[16].mxu0  ;;  %3854 = vst [vmem:[%s6435_s8 + $0x10] sm:$0xff] %v3822_v34  ;;  %v3823_v23 = vmul.f32 %v5037_v31, %v6342_v9  ;;  %5058 = vpow2.f32 %v4203_v56 }
 0x207   : > { %v5039_v4 = vpop.eup %5038  ;;  %v4706_v18 = vadd.f32 %v4674_v11, %v6353_v10  ;;  %v3430_v25 = vpop.f32.mrb[17].mxu0  ;;  %3852 = vst [vmem:[%s6435_s8] sm:$0xff] %v3820_v43  ;;  %5060 = vpow2.f32 %v4206_v16 }
 0x208   : > { %v5041_v51 = vpop.eup %5040  ;;  %v3821_v38 = vmul.f32 %v5039_v4, %v6346_v13  ;;  %v4707_v61 = vadd.f32 %v3430_v25, %v6358_v3  ;;  %v4675_v21 = vpop.f32.mrb[18].mxu0  ;;  %3855 = vst [vmem:[%s6435_s8 + $0x18] sm:$0xff] %v3823_v23  ;;  %5062 = vpow2.f32 %v4204_v37 }
 0x209   : > { %v5043_v2 = vpop.eup %5042  ;;  %v3734_v47 = vadd.f32 1.0, %v5041_v51  ;;  %v6445_v35 = vadd.f32 %v4706_v18, %v6332_v19  ;;  %v4708_v9 = vadd.f32 %v4675_v21, %v6364_v12  ;;  %v3433_v10 = vpop.f32.mrb[19].mxu0 }
 0x20a   : > { %v5045_v57 = vpop.eup %5044  ;;  %3853 = vst [vmem:[%s6435_s8 + $0x8] sm:$0xff] %v3821_v38  ;;  %v3732_v39 = vadd.f32 1.0, %v5043_v2  ;;  %v6452_v13 = vadd.f32 %v4707_v61, %v6332_v19  ;;  %v4709_v3 = vadd.f32 %v3433_v10, %v6370_v30 }
 0x20b   : > { %v6448_v24 = vpop.f32.mrb[28].mxu1  ;;  %v5047_v52 = vpop.eup %5046  ;;  %5064 = vrcp.f32 %v3734_v47  ;;  %v3735_v29 = vadd.f32 1.0, %v5045_v57  ;;  %v4209_v46 = vmul.f32 -1.442695, %v6445_v35  ;;  %v6459_v12 = vadd.f32 %v4708_v9, %v6332_v19 }
 0x20c   : > { %v6455_v0 = vpop.f32.mrb[29].mxu1  ;;  %v5049_v20 = vpop.eup %5048  ;;  %5066 = vrcp.f32 %v3732_v39  ;;  %v3733_v6 = vadd.f32 1.0, %v5047_v52  ;;  %v4207_v49 = vmul.f32 -1.442695, %v6452_v13  ;;  %v6465_v30 = vadd.f32 %v4709_v3, %v6332_v19 }
 0x20d   : > { %v6461_v40 = vpop.f32.mrb[30].mxu1  ;;  %v5051_v15 = vpop.eup %5050  ;;  %v3826_v22 = vmul.f32 %v5049_v20, %v6351_v7  ;;  %5068 = vrcp.f32 %v3735_v29  ;;  %v4210_v36 = vmul.f32 -1.442695, %v6459_v12 }
 0x20e   : > { %v6467_v28 = vpop.f32.mrb[31].mxu1  ;;  %v5053_v50 = vpop.eup %5052  ;;  %v3824_v62 = vmul.f32 %v5051_v15, %v6356_v17  ;;  %5070 = vrcp.f32 %v3733_v6  ;;  %v4208_v48 = vmul.f32 -1.442695, %v6465_v30 }
 0x20f   : > { %v4678_v56 = vpop.f32.mrb[20].mxu0  ;;  %v5055_v53 = vpop.eup %5054  ;;  %3858 = vst [vmem:[%s6435_s8 + $0x30] sm:$0xff] %v3826_v22  ;;  %v3827_v34 = vmul.f32 %v5053_v50, %v6362_v42  ;;  %5072 = vpow2.f32 %v4209_v46 }
 0x210   : > { %v4710_v16 = vadd.f32 %v4678_v56, %v6377_v5  ;;  %v3446_v7 = vpop.f32.mrb[21].mxu0  ;;  %v5057_v31 = vpop.eup %5056  ;;  %3856 = vst [vmem:[%s6435_s8 + $0x20] sm:$0xff] %v3824_v62  ;;  %v3825_v43 = vmul.f32 %v5055_v53, %v6368_v59  ;;  %5074 = vpow2.f32 %v4207_v49 }
 0x211   : > { %v4711_v17 = vadd.f32 %v3446_v7, %v6383_v55  ;;  %v4679_v37 = vpop.f32.mrb[22].mxu0  ;;  %v5059_v11 = vpop.eup %5058  ;;  %3859 = vst [vmem:[%s6435_s8 + $0x38] sm:$0xff] %v3827_v34  ;;  %v3738_v4 = vadd.f32 1.0, %v5057_v31  ;;  %5076 = vpow2.f32 %v4210_v36 }
 0x212   : > { %v6481_v23 = vadd.f32 %v4710_v16, %v6332_v19  ;;  %v4712_v42 = vadd.f32 %v4679_v37, %v6389_v63  ;;  %v3449_v5 = vpop.f32.mrb[23].mxu0  ;;  %v5061_v18 = vpop.eup %5060  ;;  %3857 = vst [vmem:[%s6435_s8 + $0x28] sm:$0xff] %v3825_v43  ;;  %v3736_v25 = vadd.f32 1.0, %v5059_v11  ;;  %5078 = vpow2.f32 %v4208_v48 }
 0x213   : > { %v6486_v59 = vadd.f32 %v4711_v17, %v6332_v19  ;;  %v4713_v55 = vadd.f32 %v3449_v5, %v6395_v27  ;;  %v5063_v51 = vpop.eup %5062  ;;  %5080 = vrcp.f32 %v3738_v4  ;;  %v3739_v38 = vadd.f32 1.0, %v5061_v18 }
 0x214   : > { %v4213_v61 = vmul.f32 -1.442695, %v6481_v23  ;;  %v6491_v21 = vadd.f32 %v4712_v42, %v6332_v19  ;;  %5082 = vrcp.f32 %v3736_v25  ;;  %v3737_v63 = vadd.f32 1.0, %v5063_v51 }
 0x215   : > { %v4211_v2 = vmul.f32 -1.442695, %v6486_v59  ;;  %v6495_v47 = vadd.f32 %v4713_v55, %v6332_v19  ;;  %v5065_v9 = vpop.eup %5064  ;;  %5084 = vrcp.f32 %v3739_v38  ;;  %v4682_v3 = vpop.f32.mrb[24].mxu0 }
 0x216   : > { %v4214_v27 = vmul.f32 -1.442695, %v6491_v21  ;;  %v5067_v10 = vpop.eup %5066  ;;  %v3830_v57 = vmul.f32 %v5065_v9, %v6375_v45  ;;  %5086 = vrcp.f32 %v3737_v63  ;;  %v4714_v46 = vadd.f32 %v4682_v3, %v6410_v14  ;;  %v3462_v20 = vpop.f32.mrb[25].mxu0 }
 0x217   : > { %v4212_v39 = vmul.f32 -1.442695, %v6495_v47  ;;  %v5069_v52 = vpop.eup %5068  ;;  %v3828_v29 = vmul.f32 %v5067_v10, %v6380_v26  ;;  %5088 = vpow2.f32 %v4213_v61  ;;  %v4715_v45 = vadd.f32 %v3462_v20, %v6416_v58  ;;  %v4683_v15 = vpop.f32.mrb[26].mxu0 }
 0x218   : > { %v5071_v6 = vpop.eup %5070  ;;  %3862 = vst [vmem:[%s6435_s8 + $0x50] sm:$0xff] %v3830_v57  ;;  %v3831_v49 = vmul.f32 %v5069_v52, %v6387_v44  ;;  %5090 = vpow2.f32 %v4211_v2  ;;  %v6508_v26 = vadd.f32 %v4714_v46, %v6332_v19  ;;  %v4716_v14 = vadd.f32 %v4683_v15, %v6422_v1  ;;  %v3465_v50 = vpop.f32.mrb[27].mxu0 }
 0x219   : > { %v5073_v22 = vpop.eup %5072  ;;  %3860 = vst [vmem:[%s6435_s8 + $0x40] sm:$0xff] %v3828_v29  ;;  %v3829_v36 = vmul.f32 %v5071_v6, %v6393_v41  ;;  %5092 = vpow2.f32 %v4214_v27  ;;  %v6513_v44 = vadd.f32 %v4715_v45, %v6332_v19  ;;  %v4717_v58 = vadd.f32 %v3465_v50, %v6428_v54 }
 0x21a   : > { %v5075_v62 = vpop.eup %5074  ;;  %3863 = vst [vmem:[%s6435_s8 + $0x58] sm:$0xff] %v3831_v49  ;;  %v3742_v48 = vadd.f32 1.0, %v5073_v22  ;;  %5094 = vpow2.f32 %v4212_v39  ;;  %v6518_v41 = vadd.f32 %v4716_v14, %v6332_v19  ;;  %v4217_v1 = vmul.f32 -1.442695, %v6508_v26 }
 0x21b   : > { %v5077_v56 = vpop.eup %5076  ;;  %3861 = vst [vmem:[%s6435_s8 + $0x48] sm:$0xff] %v3829_v36  ;;  %v3740_v53 = vadd.f32 1.0, %v5075_v62  ;;  %v6522_v7 = vadd.f32 %v4717_v58, %v6332_v19  ;;  %v4215_v54 = vmul.f32 -1.442695, %v6513_v44 }
 0x21c   : > { %v5079_v34 = vpop.eup %5078  ;;  %5096 = vrcp.f32 %v3742_v48  ;;  %v3743_v16 = vadd.f32 1.0, %v5077_v56  ;;  %v4218_v11 = vmul.f32 -1.442695, %v6518_v41 }
 0x21d   : > { %v5081_v31 = vpop.eup %5080  ;;  %5098 = vrcp.f32 %v3740_v53  ;;  %v3741_v43 = vadd.f32 1.0, %v5079_v34  ;;  %v4686_v4 = vpop.f32.mrb[28].mxu0  ;;  %v4216_v18 = vmul.f32 -1.442695, %v6522_v7 }
 0x21e   : > { %v5083_v17 = vpop.eup %5082  ;;  %v3834_v37 = vmul.f32 %v5081_v31, %v6407_v32  ;;  %5100 = vrcp.f32 %v3743_v16  ;;  %v4718_v25 = vadd.f32 %v4686_v4, %v6448_v24  ;;  %v3478_v55 = vpop.f32.mrb[29].mxu0 }
 0x21f   : > { %v5085_v42 = vpop.eup %5084  ;;  %v3832_v5 = vmul.f32 %v5083_v17, %v6413_v60  ;;  %5102 = vrcp.f32 %v3741_v43  ;;  %v4719_v32 = vadd.f32 %v3478_v55, %v6455_v0  ;;  %v4687_v61 = vpop.f32.mrb[30].mxu0 }
 0x220   : > { %v5087_v51 = vpop.eup %5086  ;;  %3866 = vst [vmem:[%s6435_s8 + $0x70] sm:$0xff] %v3834_v37  ;;  %v3835_v38 = vmul.f32 %v5085_v42, %v6420_v33  ;;  %5104 = vpow2.f32 %v4217_v1  ;;  %v6536_v2 = vadd.f32 %v4718_v25, %v6332_v19  ;;  %v4720_v24 = vadd.f32 %v4687_v61, %v6461_v40  ;;  %v3481_v9 = vpop.f32.mrb[31].mxu0 }
 0x221   : > { %v5089_v63 = vpop.eup %5088  ;;  %3864 = vst [vmem:[%s6435_s8 + $0x60] sm:$0xff] %v3832_v5  ;;  %v3833_v60 = vmul.f32 %v5087_v51, %v6426_v8  ;;  %5106 = vpow2.f32 %v4215_v54  ;;  %v6541_v33 = vadd.f32 %v4719_v32, %v6332_v19  ;;  %v4721_v0 = vadd.f32 %v3481_v9, %v6467_v28 }
 0x222   : > { %v5091_v27 = vpop.eup %5090  ;;  %3867 = vst [vmem:[%s6435_s8 + $0x78] sm:$0xff] %v3835_v38  ;;  %v3746_v10 = vadd.f32 1.0, %v5089_v63  ;;  %5108 = vpow2.f32 %v4218_v11  ;;  %v6546_v8 = vadd.f32 %v4720_v24, %v6332_v19  ;;  %v4221_v52 = vmul.f32 -1.442695, %v6536_v2 }
 0x223   : > { %v5093_v57 = vpop.eup %5092  ;;  %3865 = vst [vmem:[%s6435_s8 + $0x68] sm:$0xff] %v3833_v60  ;;  %v3744_v39 = vadd.f32 1.0, %v5091_v27  ;;  %5110 = vpow2.f32 %v4216_v18  ;;  %v6550_v29 = vadd.f32 %v4721_v0, %v6332_v19  ;;  %v4219_v28 = vmul.f32 -1.442695, %v6541_v33 }
 0x224   : > { %v5095_v3 = vpop.eup %5094  ;;  %5112 = vrcp.f32 %v3746_v10  ;;  %v3747_v40 = vadd.f32 1.0, %v5093_v57  ;;  %v4222_v6 = vmul.f32 -1.442695, %v6546_v8 }
 0x225   : > { %5114 = vrcp.f32 %v3744_v39  ;;  %v3745_v46 = vadd.f32 1.0, %v5095_v3  ;;  %v4220_v15 = vmul.f32 -1.442695, %v6550_v29 }
 0x226   : > { %v5097_v20 = vpop.eup %5096  ;;  %5116 = vrcp.f32 %v3747_v40 }
 0x227   : > { %v5099_v49 = vpop.eup %5098  ;;  %v3838_v45 = vmul.f32 %v5097_v20, %v6445_v35  ;;  %5118 = vrcp.f32 %v3745_v46 }
 0x228   : > { %v5101_v22 = vpop.eup %5100  ;;  %v3836_v19 = vmul.f32 %v5099_v49, %v6452_v13  ;;  %5120 = vpow2.f32 %v4221_v52 }
 0x229   : > { %v5103_v36 = vpop.eup %5102  ;;  %3870 = vst [vmem:[%s6435_s8 + $0x90] sm:$0xff] %v3838_v45  ;;  %v3839_v14 = vmul.f32 %v5101_v22, %v6459_v12  ;;  %5122 = vpow2.f32 %v4219_v28 }
 0x22a   : > { %v5105_v50 = vpop.eup %5104  ;;  %3868 = vst [vmem:[%s6435_s8 + $0x80] sm:$0xff] %v3836_v19  ;;  %v3837_v62 = vmul.f32 %v5103_v36, %v6465_v30  ;;  %5124 = vpow2.f32 %v4222_v6 }
 0x22b   : > { %v5107_v48 = vpop.eup %5106  ;;  %3871 = vst [vmem:[%s6435_s8 + $0x98] sm:$0xff] %v3839_v14  ;;  %v3750_v35 = vadd.f32 1.0, %v5105_v50  ;;  %5126 = vpow2.f32 %v4220_v15 }
 0x22c   : > { %v5109_v58 = vpop.eup %5108  ;;  %3869 = vst [vmem:[%s6435_s8 + $0x88] sm:$0xff] %v3837_v62  ;;  %v3748_v56 = vadd.f32 1.0, %v5107_v48 }
 0x22d   : > { %v5111_v13 = vpop.eup %5110  ;;  %5128 = vrcp.f32 %v3750_v35  ;;  %v3751_v53 = vadd.f32 1.0, %v5109_v58 }
 0x22e   : > { %v5113_v34 = vpop.eup %5112  ;;  %5130 = vrcp.f32 %v3748_v56  ;;  %v3749_v12 = vadd.f32 1.0, %v5111_v13 }
 0x22f   : > { %v5115_v16 = vpop.eup %5114  ;;  %v3842_v30 = vmul.f32 %v5113_v34, %v6481_v23  ;;  %5132 = vrcp.f32 %v3751_v53 }
 0x230   : > { %v5117_v1 = vpop.eup %5116  ;;  %v3840_v31 = vmul.f32 %v5115_v16, %v6486_v59  ;;  %5134 = vrcp.f32 %v3749_v12 }
 0x231   : > { %v5119_v43 = vpop.eup %5118  ;;  %3874 = vst [vmem:[%s6435_s8 + $0xb0] sm:$0xff] %v3842_v30  ;;  %v3843_v54 = vmul.f32 %v5117_v1, %v6491_v21 }
 0x232   : > { %v5121_v17 = vpop.eup %5120  ;;  %3872 = vst [vmem:[%s6435_s8 + $0xa0] sm:$0xff] %v3840_v31  ;;  %v3841_v37 = vmul.f32 %v5119_v43, %v6495_v47 }
 0x233   : > { %v5123_v11 = vpop.eup %5122  ;;  %3875 = vst [vmem:[%s6435_s8 + $0xb8] sm:$0xff] %v3843_v54  ;;  %v3754_v4 = vadd.f32 1.0, %v5121_v17 }
 0x234   : > { %v5125_v42 = vpop.eup %5124  ;;  %3873 = vst [vmem:[%s6435_s8 + $0xa8] sm:$0xff] %v3841_v37  ;;  %v3752_v23 = vadd.f32 1.0, %v5123_v11 }
 0x235   : > { %v5127_v5 = vpop.eup %5126  ;;  %5136 = vrcp.f32 %v3754_v4  ;;  %v3755_v59 = vadd.f32 1.0, %v5125_v42 }
 0x236   : > { %5138 = vrcp.f32 %v3752_v23  ;;  %v3753_v18 = vadd.f32 1.0, %v5127_v5 }
 0x237   : > { %v5129_v21 = vpop.eup %5128  ;;  %5140 = vrcp.f32 %v3755_v59 }
 0x238   : > { %v5131_v47 = vpop.eup %5130  ;;  %v3846_v25 = vmul.f32 %v5129_v21, %v6508_v26  ;;  %5142 = vrcp.f32 %v3753_v18 }
 0x239   : > { %v5133_v55 = vpop.eup %5132  ;;  %v3844_v51 = vmul.f32 %v5131_v47, %v6513_v44 }
 0x23a   : > { %v5135_v38 = vpop.eup %5134  ;;  %3878 = vst [vmem:[%s6435_s8 + $0xd0] sm:$0xff] %v3846_v25  ;;  %v3847_v32 = vmul.f32 %v5133_v55, %v6518_v41 }
 0x23b   : > { %3876 = vst [vmem:[%s6435_s8 + $0xc0] sm:$0xff] %v3844_v51  ;;  %v3845_v61 = vmul.f32 %v5135_v38, %v6522_v7 }
 0x23c   : > { %3879 = vst [vmem:[%s6435_s8 + $0xd8] sm:$0xff] %v3847_v32 }
 0x23d   : > { %3877 = vst [vmem:[%s6435_s8 + $0xc8] sm:$0xff] %v3845_v61 }
 0x23f   : > { %v5137_v63 = vpop.eup %5136 }
 0x240   : > { %v5139_v26 = vpop.eup %5138  ;;  %v3850_v44 = vmul.f32 %v5137_v63, %v6536_v2 }
 0x241   : > { %v5141_v60 = vpop.eup %5140  ;;  %v3848_v24 = vmul.f32 %v5139_v26, %v6541_v33 }
 0x242   : > { %v5143_v41 = vpop.eup %5142  ;;  %3882 = vst [vmem:[%s6435_s8 + $0xf0] sm:$0xff] %v3850_v44  ;;  %v3851_v9 = vmul.f32 %v5141_v60, %v6546_v8 }
 0x243   : > { %3880 = vst [vmem:[%s6435_s8 + $0xe0] sm:$0xff] %v3848_v24  ;;  %v3849_v7 = vmul.f32 %v5143_v41, %v6550_v29 }
 0x244   : > { %3883 = vst [vmem:[%s6435_s8 + $0xf8] sm:$0xff] %v3851_v9 }
 0x245   : > { %3881 = vst [vmem:[%s6435_s8 + $0xe8] sm:$0xff] %v3849_v7 }
 0x246   : > { %5158 = shalt.err (!%p5155_p3)
}
 0x247   : > { %s5159_s27 = scalar_lea.hbm %s6588_s19, 4096  ;;  %s5163_s30 = scalar_lea.hbm %s6642_s3, 8192 }
 0x248   : > { %p5160_p4 = scmp.ne.s32.totalorder %s6588_s19, %s5159_s27  ;;  %p5164_p9 = scmp.lt.u32.totalorder %s6588_s19, %s6642_s3 }
 0x249   : > { %p5165_p10 = scmp.lt.u32.totalorder %s5163_s30, %s5159_s27  ;;  %p5167_p12 = scmp.lt.u32.totalorder %s5159_s27, %s6588_s19 }
 0x24a   : > { %p5161_p7 = pnand %p5160_p4, %p5270_p5 }
 0x24b   : > { %p5166_p11 = por %p5165_p10, %p5164_p9 }
 0x24c   : > { %p5162_p8 = pneg %p5161_p7 }
 0x24d   : > { %p5168_p13 = por %p5167_p12, %p5166_p11 }
 0x24f   : > { %p5169_p0 = pnand %p5168_p13, %p5162_p8 }
 0x251   : > { %5172 = shalt.err (!%p5169_p0)
}
 0x252   : > { %s5210_s6 = smov 128   ;;  %s5211_s7 = smov 8  }
 0x253   : > { %4957 = dma.vmem_to_hbm [thread:$0]  (%p5270_p5), %s6590_s10, 4096, %s6588_s19, %s6598_s16, %s5210_s6, %s5210_s6, %s5211_s7  }
 0x254 PF: > { %p4963_p1 = scmp.ge.s32.totalorder %s5207_s15, 2  ;;  %s3913_s8 = sand.u32 1, %s5195_s12  }
 0x255   : > { %s3914_s9 = scalar_lea.sflag [#allocation4], %s3913_s8 }
 0x256   : > { %p4960_p2 = pnand %p4963_p1, %p5274_p6 }
 0x258   : > { %5190 = dma.done.wait (!%p4960_p2), %s3914_s9, 4096  }
 0x259   : > { %5192 = vsyncadd (!%p4960_p2), %s3914_s9, 4294963200  ;;  %p13_p3 = scmp.ge.s32.totalorder %s5257_s18, 4   ;;  %s6772_s12 = smov %s5199_s13 }
 0x25a   : > { %s6773_s13 = smov %s5203_s14  ;;  %s6774_s14 = smov %s5268_s21 }
 0x25b   : > { %s6775_s15 = smov %s5257_s18  ;;  %15 = sbr.rel (!%p13_p3) target bundleno = 3 (0x3), region = 75 }
 0x262   :  { %3919 = vsyncpa [#allocation4], 1 }
 0x263   :  { %3921 = vsyncpa [#allocation4 + $0x1], 1 }

</bundles_post_ra>
